<compile_context>
chip_gen: v5e
topology: v5e:2x2
jax: 0.10.0
libtpu: 0.0.40
codegen_flags: <defaults>
</compile_context>

<pallas_src>
import functools

import jax
import jax.numpy as jnp
from jax.experimental import pallas as pl
from jax.experimental.pallas import tpu as pltpu


def _round_up(x, m):
    return ((x + m - 1) // m) * m


# -----------------------------------------------------------------------------
# Packed-weight layout: one contiguous (rows, 4H) slab, static row offsets
# -----------------------------------------------------------------------------
def _weight_layout(input_dim, hidden_dim, num_layers, pred_len):
    H = hidden_dim
    lanes = 4 * H
    # FC weight/bias are packed into the same 4H-lane slab (first pred_len cols).
    assert pred_len <= lanes, "pred_len must fit in the 4H lane slab"
    layers = []
    r = 0
    for layer in range(num_layers):
        d_in = input_dim if layer == 0 else H
        d_pad = _round_up(d_in, 8)           # sublane-aligned row block
        layers.append(dict(wx_off=r, d_in=d_in, d_pad=d_pad,
                           wh_off=r + d_pad, b_off=r + d_pad + H))
        r += d_pad + H + 8                   # bias block padded to 8 rows
    fc_w_off = r
    r += _round_up(H, 8)
    fc_b_off = r
    r += 8
    return dict(layers=layers, fc_w_off=fc_w_off, fc_b_off=fc_b_off,
                rows=r, lanes=lanes)


# -----------------------------------------------------------------------------
# Fused Pallas kernel: all LSTM layers + final Linear in one invocation
# -----------------------------------------------------------------------------
def _fused_lstm_fc_kernel(x_ref, w_ref, out_ref, h_scr, c_scr, seq_scr, gx_scr,
                          *, layout, hidden_dim, seq_len, batch_pad):
    """Whole LSTMForecast forward.

      x_ref   : (T*Bp, Dp)   time-major, batch-padded, lane-padded input
      w_ref   : (rows, 4H)   packed weights (all layers + FC), static offsets
      out_ref : (Bp, 4H)     lane-dense output; cols [0:pred_len] are real
      scratch : h (Bp,H), c (Bp,H), seq (T*Bp,H), gx (T*Bp,4H)
    Gate column order in the packed weights is (i, f, o, g).
    """
    H, T, Bp = hidden_dim, seq_len, batch_pad
    num_layers = len(layout["layers"])

    for l, spec in enumerate(layout["layers"]):
        in_ref = x_ref if l == 0 else seq_scr
        last = l == num_layers - 1

        w_x = w_ref[spec["wx_off"]:spec["wx_off"] + spec["d_pad"], :]  # (Dp,4H)
        w_h = w_ref[spec["wh_off"]:spec["wh_off"] + H, :]              # (H, 4H)
        b = w_ref[spec["b_off"]:spec["b_off"] + 1, :]                  # (1, 4H)

        # Input->gate projection for ALL timesteps in one MXU call
        # (independent of h, so it sits off the serial recurrence chain).
        gx_scr[...] = (
            jnp.dot(in_ref[...], w_x, preferred_element_type=jnp.float32) + b)

        h_scr[...] = jnp.zeros_like(h_scr)
        c_scr[...] = jnp.zeros_like(c_scr)

        def step(t, carry, w_h=w_h, last=last):
            # Sublane-aligned dynamic slice into the per-step gate rows.
            row = pl.multiple_of(t * Bp, 8)
            # Only h_{t-1} @ W_hh remains on the serial dependency chain; the
            # RHS is loop-invariant, so Mosaic can keep it staged in the MXU
            # across the (bounded-unroll) loop body.
            gates = gx_scr[pl.ds(row, Bp), :] + jnp.dot(
                h_scr[...], w_h, preferred_element_type=jnp.float32)
            sg = jax.nn.sigmoid(gates[:, : 3 * H])   # i | f | o, contiguous
            g = jnp.tanh(gates[:, 3 * H:])           # g
            c_new = sg[:, H:2 * H] * c_scr[...] + sg[:, :H] * g
            h_new = sg[:, 2 * H:3 * H] * jnp.tanh(c_new)
            c_scr[...] = c_new
            h_scr[...] = h_new
            if not last:
                # Hidden sequence feeds the next layer; never leaves VMEM.
                seq_scr[pl.ds(row, Bp), :] = h_new
            return carry

        # Bounded unroll: LLO scheduling visibility without vreg-spill blowup.
        jax.lax.fori_loop(0, T, step, 0, unroll=min(T, 8))

    # Final Linear on the last hidden state (already resident in VMEM scratch).
    # Output is a full 128-lane slab -> unmasked vector stores.
    fc_w = w_ref[layout["fc_w_off"]:layout["fc_w_off"] + H, :]   # (H, 4H)
    fc_b = w_ref[layout["fc_b_off"]:layout["fc_b_off"] + 1, :]   # (1, 4H)
    out_ref[...] = (
        jnp.dot(h_scr[...], fc_w, preferred_element_type=jnp.float32) + fc_b)


# -----------------------------------------------------------------------------
# Wrapper
# -----------------------------------------------------------------------------
def lstm_forecast_forward(x, packed):
    """x: (B, T, input_dim), batch-first like the PyTorch module.

    Returns (B, pred_len, 1) == self.fc(out[:, -1, :]).unsqueeze(-1)."""
    B, T, D = x.shape
    layout = packed["layout"]
    H = packed["hidden_dim"]
    P = packed["pred_len"]
    G = layout["lanes"]                     # 4H
    Dp = layout["layers"][0]["d_pad"]       # lane-padded input width
    # Pad batch to a full sublane tile.  As B grows this automatically fills
    # MXU rows (the biggest throughput lever per the perf review).
    Bp = _round_up(max(B, 8), 8)

    # (B, T, D) -> time-major, batch-padded, lane-padded, time-flattened.
    x_tm = jnp.transpose(x, (1, 0, 2)).astype(jnp.float32)
    x_tm = jnp.pad(x_tm, ((0, 0), (0, Bp - B), (0, Dp - D)))
    x_flat = x_tm.reshape(T * Bp, Dp)

    kernel = functools.partial(
        _fused_lstm_fc_kernel,
        layout=layout, hidden_dim=H, seq_len=T, batch_pad=Bp)

    # Scoped-VMEM budget derived from the actual working set (+ headroom).
    itemsize = 4
    need = itemsize * (
        x_flat.size + packed["weights"].size + Bp * G          # inputs + out
        + 2 * Bp * H + T * Bp * H + T * Bp * G)                # scratch
    vmem_limit = int(min(max(2 * need + (4 << 20), 32 << 20), 64 << 20))

    out = pl.pallas_call(
        kernel,
        out_shape=jax.ShapeDtypeStruct((Bp, G), jnp.float32),
        scratch_shapes=[
            pltpu.VMEM((Bp, H), jnp.float32),          # h state
            pltpu.VMEM((Bp, H), jnp.float32),          # c state
            pltpu.VMEM((T * Bp, H), jnp.float32),      # inter-layer hidden seq
            pltpu.VMEM((T * Bp, G), jnp.float32),      # precomputed x->gates
        ],
        compiler_params=pltpu.CompilerParams(vmem_limit_bytes=vmem_limit),
    )(x_flat, packed["weights"])

    return out[:B, :P, None]


# -----------------------------------------------------------------------------
# Parameters: PyTorch-layout init + packing into the fused-kernel layout
# -----------------------------------------------------------------------------
def init_params(key, input_dim, hidden_dim, num_layers, pred_len):
    """PyTorch-style uniform(-1/sqrt(H), 1/sqrt(H)); gate order (i, f, g, o)."""
    bound = 1.0 / jnp.sqrt(jnp.float32(hidden_dim))
    raw = {"lstm": []}
    for layer in range(num_layers):
        d_in = input_dim if layer == 0 else hidden_dim
        key, k1, k2, k3, k4 = jax.random.split(key, 5)
        raw["lstm"].append({
            "w_ih": jax.random.uniform(k1, (4 * hidden_dim, d_in),
                                       jnp.float32, -bound, bound),
            "w_hh": jax.random.uniform(k2, (4 * hidden_dim, hidden_dim),
                                       jnp.float32, -bound, bound),
            "b_ih": jax.random.uniform(k3, (4 * hidden_dim,),
                                       jnp.float32, -bound, bound),
            "b_hh": jax.random.uniform(k4, (4 * hidden_dim,),
                                       jnp.float32, -bound, bound),
        })
    key, k5, k6 = jax.random.split(key, 3)
    raw["fc_w"] = jax.random.uniform(k5, (pred_len, hidden_dim),
                                     jnp.float32, -bound, bound)
    raw["fc_b"] = jax.random.uniform(k6, (pred_len,), jnp.float32,
                                     -bound, bound)
    return raw


def _reorder_ifgo_to_ifog(w):
    """Permute PyTorch gate blocks (i,f,g,o) -> (i,f,o,g) along axis 0."""
    H = w.shape[0] // 4
    return jnp.concatenate([w[:2 * H], w[3 * H:], w[2 * H:3 * H]], axis=0)


def pack_params(raw):
    """Convert PyTorch-layout params into one packed (rows, 4H) weight slab."""
    num_layers = len(raw["lstm"])
    H = raw["lstm"][0]["w_hh"].shape[1]
    input_dim = raw["lstm"][0]["w_ih"].shape[1]
    pred_len = raw["fc_w"].shape[0]
    layout = _weight_layout(input_dim, H, num_layers, pred_len)

    W = jnp.zeros((layout["rows"], layout["lanes"]), jnp.float32)
    for spec, layer in zip(layout["layers"], raw["lstm"]):
        w_ih = _reorder_ifgo_to_ifog(layer["w_ih"])                # (4H, D_l)
        w_hh = _reorder_ifgo_to_ifog(layer["w_hh"])                # (4H, H)
        b = _reorder_ifgo_to_ifog(layer["b_ih"] + layer["b_hh"])   # (4H,)
        W = W.at[spec["wx_off"]:spec["wx_off"] + spec["d_in"], :].set(w_ih.T)
        W = W.at[spec["wh_off"]:spec["wh_off"] + H, :].set(w_hh.T)
        W = W.at[spec["b_off"], :].set(b)
    W = W.at[layout["fc_w_off"]:layout["fc_w_off"] + H, :pred_len].set(
        raw["fc_w"].T)
    W = W.at[layout["fc_b_off"], :pred_len].set(raw["fc_b"])

    return dict(weights=W, layout=layout, hidden_dim=H, pred_len=pred_len,
                input_dim=input_dim, num_layers=num_layers)


# -----------------------------------------------------------------------------
# Pure-JAX reference (PyTorch semantics, original i,f,g,o gate order)
# -----------------------------------------------------------------------------
def reference_forward(x, raw):
    h_seq = jnp.transpose(x, (1, 0, 2)).astype(jnp.float32)  # (T, B, D)
    for layer in raw["lstm"]:
        H = layer["w_hh"].shape[1]
        B = h_seq.shape[1]
        w_ih_t = layer["w_ih"].T
        w_hh_t = layer["w_hh"].T
        b = (layer["b_ih"] + layer["b_hh"])[None, :]

        def step(carry, x_t, w_ih_t=w_ih_t, w_hh_t=w_hh_t, b=b, H=H):
            h, c = carry
            gates = x_t @ w_ih_t + h @ w_hh_t + b
            i = jax.nn.sigmoid(gates[:, 0 * H:1 * H])
            f = jax.nn.sigmoid(gates[:, 1 * H:2 * H])
            g = jnp.tanh(gates[:, 2 * H:3 * H])
            o = jax.nn.sigmoid(gates[:, 3 * H:4 * H])
            c = f * c + i * g
            h = o * jnp.tanh(c)
            return (h, c), h

        init = (jnp.zeros((B, H), jnp.float32), jnp.zeros((B, H), jnp.float32))
        _, h_seq = jax.lax.scan(step, init, h_seq)
    out = h_seq[-1] @ raw["fc_w"].T + raw["fc_b"][None, :]
    return out[:, :, None]


# -----------------------------------------------------------------------------
# Main
# -----------------------------------------------------------------------------
if __name__ == "__main__":
    B, T = 2, 8
    input_dim, hidden_dim, num_layers, pred_len = 4, 32, 2, 4

    key = jax.random.PRNGKey(0)
    key, kx = jax.random.split(key)
    x = jax.random.normal(kx, (B, T, input_dim), jnp.float32)

    raw_params = init_params(key, input_dim, hidden_dim, num_layers, pred_len)
    packed_params = pack_params(raw_params)

    out = jax.block_until_ready(lstm_forecast_forward(x, packed_params))
    ref = jax.block_until_ready(reference_forward(x, raw_params))

    assert out.shape == (B, pred_len, 1), out.shape
    assert jnp.allclose(out, ref, atol=1e-4, rtol=1e-4), (
        float(jnp.max(jnp.abs(out - ref))))

    print("KERNEL_OK")
</pallas_src>

<mosaic_0001>
module attributes {stable_mosaic.version = 11 : i64} {
  func.func @_fused_lstm_fc_kernel(%arg0: memref<64x8xf32, #tpu.memory_space<vmem>>, %arg1: memref<160x128xf32, #tpu.memory_space<vmem>>, %arg2: memref<8x128xf32, #tpu.memory_space<vmem>>, %arg3: memref<8x32xf32, #tpu.memory_space<vmem>>, %arg4: memref<8x32xf32, #tpu.memory_space<vmem>>, %arg5: memref<64x32xf32, #tpu.memory_space<vmem>>, %arg6: memref<64x128xf32, #tpu.memory_space<vmem>>) attributes {dimension_semantics = [], scalar_prefetch = 0 : i64, scratch_operands = 4 : i64, tpu.core_type = #tpu.core_type<tc>} {
    %c0 = arith.constant 0 : index
    %c0_0 = arith.constant 0 : index
    %0 = vector.load %arg1[%c0, %c0_0] : memref<160x128xf32, #tpu.memory_space<vmem>>, vector<8x128xf32>
    %c8 = arith.constant 8 : index
    %c0_1 = arith.constant 0 : index
    %1 = vector.load %arg1[%c8, %c0_1] : memref<160x128xf32, #tpu.memory_space<vmem>>, vector<32x128xf32>
    %c40 = arith.constant 40 : index
    %c0_2 = arith.constant 0 : index
    %2 = vector.load %arg1[%c40, %c0_2] : memref<160x128xf32, #tpu.memory_space<vmem>>, vector<1x128xf32>
    %c0_3 = arith.constant 0 : index
    %c0_4 = arith.constant 0 : index
    %3 = vector.load %arg0[%c0_3, %c0_4] : memref<64x8xf32, #tpu.memory_space<vmem>>, vector<64x8xf32>
    %cst = arith.constant dense<0.000000e+00> : vector<64x128xf32>
    %4 = tpu.matmul %3, %0, %cst {dimension_numbers = #tpu.dot_dimension_numbers<[1], [0], [0], [1], [0, 0, 1, 1], [], []>} : vector<64x8xf32>, vector<8x128xf32>, vector<64x128xf32> -> vector<64x128xf32>
    %5 = vector.broadcast %2 : vector<1x128xf32> to vector<64x128xf32>
    %6 = arith.addf %4, %5 : vector<64x128xf32>
    %c0_5 = arith.constant 0 : index
    %c0_6 = arith.constant 0 : index
    %7 = vector.load %arg6[%c0_5, %c0_6] : memref<64x128xf32, #tpu.memory_space<vmem>>, vector<64x128xf32>
    tpu.vector_store %arg6[%c0_5, %c0_6], %6 {strides = array<i32>} : memref<64x128xf32, #tpu.memory_space<vmem>>, vector<64x128xf32>,
    %cst_7 = arith.constant 0.000000e+00 : f32
    %8 = vector.broadcast %cst_7 : f32 to vector<8x32xf32>
    %c0_8 = arith.constant 0 : index
    %c0_9 = arith.constant 0 : index
    %9 = vector.load %arg3[%c0_8, %c0_9] : memref<8x32xf32, #tpu.memory_space<vmem>>, vector<8x32xf32>
    tpu.vector_store %arg3[%c0_8, %c0_9], %8 {strides = array<i32>} : memref<8x32xf32, #tpu.memory_space<vmem>>, vector<8x32xf32>,
    %cst_10 = arith.constant 0.000000e+00 : f32
    %10 = vector.broadcast %cst_10 : f32 to vector<8x32xf32>
    %c0_11 = arith.constant 0 : index
    %c0_12 = arith.constant 0 : index
    %11 = vector.load %arg4[%c0_11, %c0_12] : memref<8x32xf32, #tpu.memory_space<vmem>>, vector<8x32xf32>
    tpu.vector_store %arg4[%c0_11, %c0_12], %10 {strides = array<i32>} : memref<8x32xf32, #tpu.memory_space<vmem>>, vector<8x32xf32>,
    %c0_i32 = arith.constant 0 : i32
    %c8_i32 = arith.constant 8 : i32
    %12 = arith.muli %c0_i32, %c8_i32 : i32
    %13 = tpu.assume_multiple %12, 8 : i32
    %14 = arith.index_cast %13 : i32 to index
    %c0_13 = arith.constant 0 : index
    %15 = vector.load %arg6[%14, %c0_13] : memref<64x128xf32, #tpu.memory_space<vmem>>, vector<8x128xf32>
    %c0_14 = arith.constant 0 : index
    %c0_15 = arith.constant 0 : index
    %16 = vector.load %arg3[%c0_14, %c0_15] : memref<8x32xf32, #tpu.memory_space<vmem>>, vector<8x32xf32>
    %cst_16 = arith.constant dense<0.000000e+00> : vector<8x128xf32>
    %17 = tpu.matmul %16, %1, %cst_16 {dimension_numbers = #tpu.dot_dimension_numbers<[1], [0], [0], [1], [0, 0, 1, 1], [], []>} : vector<8x32xf32>, vector<32x128xf32>, vector<8x128xf32> -> vector<8x128xf32>
    %18 = arith.addf %15, %17 : vector<8x128xf32>
    %19 = vector.extract_strided_slice %18 {offsets = [0, 0], sizes = [8, 96], strides = [1, 1]} : vector<8x128xf32> to vector<8x96xf32>
    %20 = arith.negf %19 : vector<8x96xf32>
    %21 = math.exp %20 : vector<8x96xf32>
    %cst_17 = arith.constant 1.000000e+00 : f32
    %22 = vector.broadcast %cst_17 : f32 to vector<8x96xf32>
    %23 = arith.addf %22, %21 : vector<8x96xf32>
    %24 = arith.divf %22, %23 : vector<8x96xf32>
    %25 = vector.extract_strided_slice %18 {offsets = [0, 96], sizes = [8, 32], strides = [1, 1]} : vector<8x128xf32> to vector<8x32xf32>
    %26 = math.tanh %25 : vector<8x32xf32>
    %27 = vector.extract_strided_slice %24 {offsets = [0, 32], sizes = [8, 32], strides = [1, 1]} : vector<8x96xf32> to vector<8x32xf32>
    %c0_18 = arith.constant 0 : index
    %c0_19 = arith.constant 0 : index
    %28 = vector.load %arg4[%c0_18, %c0_19] : memref<8x32xf32, #tpu.memory_space<vmem>>, vector<8x32xf32>
    %29 = arith.mulf %27, %28 : vector<8x32xf32>
    %30 = vector.extract_strided_slice %24 {offsets = [0, 0], sizes = [8, 32], strides = [1, 1]} : vector<8x96xf32> to vector<8x32xf32>
    %31 = arith.mulf %30, %26 : vector<8x32xf32>
    %32 = arith.addf %29, %31 : vector<8x32xf32>
    %33 = vector.extract_strided_slice %24 {offsets = [0, 64], sizes = [8, 32], strides = [1, 1]} : vector<8x96xf32> to vector<8x32xf32>
    %34 = math.tanh %32 : vector<8x32xf32>
    %35 = arith.mulf %33, %34 : vector<8x32xf32>
    %c0_20 = arith.constant 0 : index
    %c0_21 = arith.constant 0 : index
    %36 = vector.load %arg4[%c0_20, %c0_21] : memref<8x32xf32, #tpu.memory_space<vmem>>, vector<8x32xf32>
    tpu.vector_store %arg4[%c0_20, %c0_21], %32 {strides = array<i32>} : memref<8x32xf32, #tpu.memory_space<vmem>>, vector<8x32xf32>,
    %c0_22 = arith.constant 0 : index
    %c0_23 = arith.constant 0 : index
    %37 = vector.load %arg3[%c0_22, %c0_23] : memref<8x32xf32, #tpu.memory_space<vmem>>, vector<8x32xf32>
    tpu.vector_store %arg3[%c0_22, %c0_23], %35 {strides = array<i32>} : memref<8x32xf32, #tpu.memory_space<vmem>>, vector<8x32xf32>,
    %38 = arith.index_cast %13 : i32 to index
    %c0_24 = arith.constant 0 : index
    %39 = vector.load %arg5[%38, %c0_24] : memref<64x32xf32, #tpu.memory_space<vmem>>, vector<8x32xf32>
    tpu.vector_store %arg5[%38, %c0_24], %35 {strides = array<i32>} : memref<64x32xf32, #tpu.memory_space<vmem>>, vector<8x32xf32>,
    %c1_i32 = arith.constant 1 : i32
    %c8_i32_25 = arith.constant 8 : i32
    %40 = arith.muli %c1_i32, %c8_i32_25 : i32
    %41 = tpu.assume_multiple %40, 8 : i32
    %42 = arith.index_cast %41 : i32 to index
    %c0_26 = arith.constant 0 : index
    %43 = vector.load %arg6[%42, %c0_26] : memref<64x128xf32, #tpu.memory_space<vmem>>, vector<8x128xf32>
    %c0_27 = arith.constant 0 : index
    %c0_28 = arith.constant 0 : index
    %44 = vector.load %arg3[%c0_27, %c0_28] : memref<8x32xf32, #tpu.memory_space<vmem>>, vector<8x32xf32>
    %cst_29 = arith.constant dense<0.000000e+00> : vector<8x128xf32>
    %45 = tpu.matmul %44, %1, %cst_29 {dimension_numbers = #tpu.dot_dimension_numbers<[1], [0], [0], [1], [0, 0, 1, 1], [], []>} : vector<8x32xf32>, vector<32x128xf32>, vector<8x128xf32> -> vector<8x128xf32>
    %46 = arith.addf %43, %45 : vector<8x128xf32>
    %47 = vector.extract_strided_slice %46 {offsets = [0, 0], sizes = [8, 96], strides = [1, 1]} : vector<8x128xf32> to vector<8x96xf32>
    %48 = arith.negf %47 : vector<8x96xf32>
    %49 = math.exp %48 : vector<8x96xf32>
    %cst_30 = arith.constant 1.000000e+00 : f32
    %50 = vector.broadcast %cst_30 : f32 to vector<8x96xf32>
    %51 = arith.addf %50, %49 : vector<8x96xf32>
    %52 = arith.divf %50, %51 : vector<8x96xf32>
    %53 = vector.extract_strided_slice %46 {offsets = [0, 96], sizes = [8, 32], strides = [1, 1]} : vector<8x128xf32> to vector<8x32xf32>
    %54 = math.tanh %53 : vector<8x32xf32>
    %55 = vector.extract_strided_slice %52 {offsets = [0, 32], sizes = [8, 32], strides = [1, 1]} : vector<8x96xf32> to vector<8x32xf32>
    %c0_31 = arith.constant 0 : index
    %c0_32 = arith.constant 0 : index
    %56 = vector.load %arg4[%c0_31, %c0_32] : memref<8x32xf32, #tpu.memory_space<vmem>>, vector<8x32xf32>
    %57 = arith.mulf %55, %56 : vector<8x32xf32>
    %58 = vector.extract_strided_slice %52 {offsets = [0, 0], sizes = [8, 32], strides = [1, 1]} : vector<8x96xf32> to vector<8x32xf32>
    %59 = arith.mulf %58, %54 : vector<8x32xf32>
    %60 = arith.addf %57, %59 : vector<8x32xf32>
    %61 = vector.extract_strided_slice %52 {offsets = [0, 64], sizes = [8, 32], strides = [1, 1]} : vector<8x96xf32> to vector<8x32xf32>
    %62 = math.tanh %60 : vector<8x32xf32>
    %63 = arith.mulf %61, %62 : vector<8x32xf32>
    %c0_33 = arith.constant 0 : index
    %c0_34 = arith.constant 0 : index
    %64 = vector.load %arg4[%c0_33, %c0_34] : memref<8x32xf32, #tpu.memory_space<vmem>>, vector<8x32xf32>
    tpu.vector_store %arg4[%c0_33, %c0_34], %60 {strides = array<i32>} : memref<8x32xf32, #tpu.memory_space<vmem>>, vector<8x32xf32>,
    %c0_35 = arith.constant 0 : index
    %c0_36 = arith.constant 0 : index
    %65 = vector.load %arg3[%c0_35, %c0_36] : memref<8x32xf32, #tpu.memory_space<vmem>>, vector<8x32xf32>
    tpu.vector_store %arg3[%c0_35, %c0_36], %63 {strides = array<i32>} : memref<8x32xf32, #tpu.memory_space<vmem>>, vector<8x32xf32>,
    %66 = arith.index_cast %41 : i32 to index
    %c0_37 = arith.constant 0 : index
    %67 = vector.load %arg5[%66, %c0_37] : memref<64x32xf32, #tpu.memory_space<vmem>>, vector<8x32xf32>
    tpu.vector_store %arg5[%66, %c0_37], %63 {strides = array<i32>} : memref<64x32xf32, #tpu.memory_space<vmem>>, vector<8x32xf32>,
    %c2_i32 = arith.constant 2 : i32
    %c8_i32_38 = arith.constant 8 : i32
    %68 = arith.muli %c2_i32, %c8_i32_38 : i32
    %69 = tpu.assume_multiple %68, 8 : i32
    %70 = arith.index_cast %69 : i32 to index
    %c0_39 = arith.constant 0 : index
    %71 = vector.load %arg6[%70, %c0_39] : memref<64x128xf32, #tpu.memory_space<vmem>>, vector<8x128xf32>
    %c0_40 = arith.constant 0 : index
    %c0_41 = arith.constant 0 : index
    %72 = vector.load %arg3[%c0_40, %c0_41] : memref<8x32xf32, #tpu.memory_space<vmem>>, vector<8x32xf32>
    %cst_42 = arith.constant dense<0.000000e+00> : vector<8x128xf32>
    %73 = tpu.matmul %72, %1, %cst_42 {dimension_numbers = #tpu.dot_dimension_numbers<[1], [0], [0], [1], [0, 0, 1, 1], [], []>} : vector<8x32xf32>, vector<32x128xf32>, vector<8x128xf32> -> vector<8x128xf32>
    %74 = arith.addf %71, %73 : vector<8x128xf32>
    %75 = vector.extract_strided_slice %74 {offsets = [0, 0], sizes = [8, 96], strides = [1, 1]} : vector<8x128xf32> to vector<8x96xf32>
    %76 = arith.negf %75 : vector<8x96xf32>
    %77 = math.exp %76 : vector<8x96xf32>
    %cst_43 = arith.constant 1.000000e+00 : f32
    %78 = vector.broadcast %cst_43 : f32 to vector<8x96xf32>
    %79 = arith.addf %78, %77 : vector<8x96xf32>
    %80 = arith.divf %78, %79 : vector<8x96xf32>
    %81 = vector.extract_strided_slice %74 {offsets = [0, 96], sizes = [8, 32], strides = [1, 1]} : vector<8x128xf32> to vector<8x32xf32>
    %82 = math.tanh %81 : vector<8x32xf32>
    %83 = vector.extract_strided_slice %80 {offsets = [0, 32], sizes = [8, 32], strides = [1, 1]} : vector<8x96xf32> to vector<8x32xf32>
    %c0_44 = arith.constant 0 : index
    %c0_45 = arith.constant 0 : index
    %84 = vector.load %arg4[%c0_44, %c0_45] : memref<8x32xf32, #tpu.memory_space<vmem>>, vector<8x32xf32>
    %85 = arith.mulf %83, %84 : vector<8x32xf32>
    %86 = vector.extract_strided_slice %80 {offsets = [0, 0], sizes = [8, 32], strides = [1, 1]} : vector<8x96xf32> to vector<8x32xf32>
    %87 = arith.mulf %86, %82 : vector<8x32xf32>
    %88 = arith.addf %85, %87 : vector<8x32xf32>
    %89 = vector.extract_strided_slice %80 {offsets = [0, 64], sizes = [8, 32], strides = [1, 1]} : vector<8x96xf32> to vector<8x32xf32>
    %90 = math.tanh %88 : vector<8x32xf32>
    %91 = arith.mulf %89, %90 : vector<8x32xf32>
    %c0_46 = arith.constant 0 : index
    %c0_47 = arith.constant 0 : index
    %92 = vector.load %arg4[%c0_46, %c0_47] : memref<8x32xf32, #tpu.memory_space<vmem>>, vector<8x32xf32>
    tpu.vector_store %arg4[%c0_46, %c0_47], %88 {strides = array<i32>} : memref<8x32xf32, #tpu.memory_space<vmem>>, vector<8x32xf32>,
    %c0_48 = arith.constant 0 : index
    %c0_49 = arith.constant 0 : index
    %93 = vector.load %arg3[%c0_48, %c0_49] : memref<8x32xf32, #tpu.memory_space<vmem>>, vector<8x32xf32>
    tpu.vector_store %arg3[%c0_48, %c0_49], %91 {strides = array<i32>} : memref<8x32xf32, #tpu.memory_space<vmem>>, vector<8x32xf32>,
    %94 = arith.index_cast %69 : i32 to index
    %c0_50 = arith.constant 0 : index
    %95 = vector.load %arg5[%94, %c0_50] : memref<64x32xf32, #tpu.memory_space<vmem>>, vector<8x32xf32>
    tpu.vector_store %arg5[%94, %c0_50], %91 {strides = array<i32>} : memref<64x32xf32, #tpu.memory_space<vmem>>, vector<8x32xf32>,
    %c3_i32 = arith.constant 3 : i32
    %c8_i32_51 = arith.constant 8 : i32
    %96 = arith.muli %c3_i32, %c8_i32_51 : i32
    %97 = tpu.assume_multiple %96, 8 : i32
    %98 = arith.index_cast %97 : i32 to index
    %c0_52 = arith.constant 0 : index
    %99 = vector.load %arg6[%98, %c0_52] : memref<64x128xf32, #tpu.memory_space<vmem>>, vector<8x128xf32>
    %c0_53 = arith.constant 0 : index
    %c0_54 = arith.constant 0 : index
    %100 = vector.load %arg3[%c0_53, %c0_54] : memref<8x32xf32, #tpu.memory_space<vmem>>, vector<8x32xf32>
    %cst_55 = arith.constant dense<0.000000e+00> : vector<8x128xf32>
    %101 = tpu.matmul %100, %1, %cst_55 {dimension_numbers = #tpu.dot_dimension_numbers<[1], [0], [0], [1], [0, 0, 1, 1], [], []>} : vector<8x32xf32>, vector<32x128xf32>, vector<8x128xf32> -> vector<8x128xf32>
    %102 = arith.addf %99, %101 : vector<8x128xf32>
    %103 = vector.extract_strided_slice %102 {offsets = [0, 0], sizes = [8, 96], strides = [1, 1]} : vector<8x128xf32> to vector<8x96xf32>
    %104 = arith.negf %103 : vector<8x96xf32>
    %105 = math.exp %104 : vector<8x96xf32>
    %cst_56 = arith.constant 1.000000e+00 : f32
    %106 = vector.broadcast %cst_56 : f32 to vector<8x96xf32>
    %107 = arith.addf %106, %105 : vector<8x96xf32>
    %108 = arith.divf %106, %107 : vector<8x96xf32>
    %109 = vector.extract_strided_slice %102 {offsets = [0, 96], sizes = [8, 32], strides = [1, 1]} : vector<8x128xf32> to vector<8x32xf32>
    %110 = math.tanh %109 : vector<8x32xf32>
    %111 = vector.extract_strided_slice %108 {offsets = [0, 32], sizes = [8, 32], strides = [1, 1]} : vector<8x96xf32> to vector<8x32xf32>
    %c0_57 = arith.constant 0 : index
    %c0_58 = arith.constant 0 : index
    %112 = vector.load %arg4[%c0_57, %c0_58] : memref<8x32xf32, #tpu.memory_space<vmem>>, vector<8x32xf32>
    %113 = arith.mulf %111, %112 : vector<8x32xf32>
    %114 = vector.extract_strided_slice %108 {offsets = [0, 0], sizes = [8, 32], strides = [1, 1]} : vector<8x96xf32> to vector<8x32xf32>
    %115 = arith.mulf %114, %110 : vector<8x32xf32>
    %116 = arith.addf %113, %115 : vector<8x32xf32>
    %117 = vector.extract_strided_slice %108 {offsets = [0, 64], sizes = [8, 32], strides = [1, 1]} : vector<8x96xf32> to vector<8x32xf32>
    %118 = math.tanh %116 : vector<8x32xf32>
    %119 = arith.mulf %117, %118 : vector<8x32xf32>
    %c0_59 = arith.constant 0 : index
    %c0_60 = arith.constant 0 : index
    %120 = vector.load %arg4[%c0_59, %c0_60] : memref<8x32xf32, #tpu.memory_space<vmem>>, vector<8x32xf32>
    tpu.vector_store %arg4[%c0_59, %c0_60], %116 {strides = array<i32>} : memref<8x32xf32, #tpu.memory_space<vmem>>, vector<8x32xf32>,
    %c0_61 = arith.constant 0 : index
    %c0_62 = arith.constant 0 : index
    %121 = vector.load %arg3[%c0_61, %c0_62] : memref<8x32xf32, #tpu.memory_space<vmem>>, vector<8x32xf32>
    tpu.vector_store %arg3[%c0_61, %c0_62], %119 {strides = array<i32>} : memref<8x32xf32, #tpu.memory_space<vmem>>, vector<8x32xf32>,
    %122 = arith.index_cast %97 : i32 to index
    %c0_63 = arith.constant 0 : index
    %123 = vector.load %arg5[%122, %c0_63] : memref<64x32xf32, #tpu.memory_space<vmem>>, vector<8x32xf32>
    tpu.vector_store %arg5[%122, %c0_63], %119 {strides = array<i32>} : memref<64x32xf32, #tpu.memory_space<vmem>>, vector<8x32xf32>,
    %c4_i32 = arith.constant 4 : i32
    %c8_i32_64 = arith.constant 8 : i32
    %124 = arith.muli %c4_i32, %c8_i32_64 : i32
    %125 = tpu.assume_multiple %124, 8 : i32
    %126 = arith.index_cast %125 : i32 to index
    %c0_65 = arith.constant 0 : index
    %127 = vector.load %arg6[%126, %c0_65] : memref<64x128xf32, #tpu.memory_space<vmem>>, vector<8x128xf32>
    %c0_66 = arith.constant 0 : index
    %c0_67 = arith.constant 0 : index
    %128 = vector.load %arg3[%c0_66, %c0_67] : memref<8x32xf32, #tpu.memory_space<vmem>>, vector<8x32xf32>
    %cst_68 = arith.constant dense<0.000000e+00> : vector<8x128xf32>
    %129 = tpu.matmul %128, %1, %cst_68 {dimension_numbers = #tpu.dot_dimension_numbers<[1], [0], [0], [1], [0, 0, 1, 1], [], []>} : vector<8x32xf32>, vector<32x128xf32>, vector<8x128xf32> -> vector<8x128xf32>
    %130 = arith.addf %127, %129 : vector<8x128xf32>
    %131 = vector.extract_strided_slice %130 {offsets = [0, 0], sizes = [8, 96], strides = [1, 1]} : vector<8x128xf32> to vector<8x96xf32>
    %132 = arith.negf %131 : vector<8x96xf32>
    %133 = math.exp %132 : vector<8x96xf32>
    %cst_69 = arith.constant 1.000000e+00 : f32
    %134 = vector.broadcast %cst_69 : f32 to vector<8x96xf32>
    %135 = arith.addf %134, %133 : vector<8x96xf32>
    %136 = arith.divf %134, %135 : vector<8x96xf32>
    %137 = vector.extract_strided_slice %130 {offsets = [0, 96], sizes = [8, 32], strides = [1, 1]} : vector<8x128xf32> to vector<8x32xf32>
    %138 = math.tanh %137 : vector<8x32xf32>
    %139 = vector.extract_strided_slice %136 {offsets = [0, 32], sizes = [8, 32], strides = [1, 1]} : vector<8x96xf32> to vector<8x32xf32>
    %c0_70 = arith.constant 0 : index
    %c0_71 = arith.constant 0 : index
    %140 = vector.load %arg4[%c0_70, %c0_71] : memref<8x32xf32, #tpu.memory_space<vmem>>, vector<8x32xf32>
    %141 = arith.mulf %139, %140 : vector<8x32xf32>
    %142 = vector.extract_strided_slice %136 {offsets = [0, 0], sizes = [8, 32], strides = [1, 1]} : vector<8x96xf32> to vector<8x32xf32>
    %143 = arith.mulf %142, %138 : vector<8x32xf32>
    %144 = arith.addf %141, %143 : vector<8x32xf32>
    %145 = vector.extract_strided_slice %136 {offsets = [0, 64], sizes = [8, 32], strides = [1, 1]} : vector<8x96xf32> to vector<8x32xf32>
    %146 = math.tanh %144 : vector<8x32xf32>
    %147 = arith.mulf %145, %146 : vector<8x32xf32>
    %c0_72 = arith.constant 0 : index
    %c0_73 = arith.constant 0 : index
    %148 = vector.load %arg4[%c0_72, %c0_73] : memref<8x32xf32, #tpu.memory_space<vmem>>, vector<8x32xf32>
    tpu.vector_store %arg4[%c0_72, %c0_73], %144 {strides = array<i32>} : memref<8x32xf32, #tpu.memory_space<vmem>>, vector<8x32xf32>,
    %c0_74 = arith.constant 0 : index
    %c0_75 = arith.constant 0 : index
    %149 = vector.load %arg3[%c0_74, %c0_75] : memref<8x32xf32, #tpu.memory_space<vmem>>, vector<8x32xf32>
    tpu.vector_store %arg3[%c0_74, %c0_75], %147 {strides = array<i32>} : memref<8x32xf32, #tpu.memory_space<vmem>>, vector<8x32xf32>,
    %150 = arith.index_cast %125 : i32 to index
    %c0_76 = arith.constant 0 : index
    %151 = vector.load %arg5[%150, %c0_76] : memref<64x32xf32, #tpu.memory_space<vmem>>, vector<8x32xf32>
    tpu.vector_store %arg5[%150, %c0_76], %147 {strides = array<i32>} : memref<64x32xf32, #tpu.memory_space<vmem>>, vector<8x32xf32>,
    %c5_i32 = arith.constant 5 : i32
    %c8_i32_77 = arith.constant 8 : i32
    %152 = arith.muli %c5_i32, %c8_i32_77 : i32
    %153 = tpu.assume_multiple %152, 8 : i32
    %154 = arith.index_cast %153 : i32 to index
    %c0_78 = arith.constant 0 : index
    %155 = vector.load %arg6[%154, %c0_78] : memref<64x128xf32, #tpu.memory_space<vmem>>, vector<8x128xf32>
    %c0_79 = arith.constant 0 : index
    %c0_80 = arith.constant 0 : index
    %156 = vector.load %arg3[%c0_79, %c0_80] : memref<8x32xf32, #tpu.memory_space<vmem>>, vector<8x32xf32>
    %cst_81 = arith.constant dense<0.000000e+00> : vector<8x128xf32>
    %157 = tpu.matmul %156, %1, %cst_81 {dimension_numbers = #tpu.dot_dimension_numbers<[1], [0], [0], [1], [0, 0, 1, 1], [], []>} : vector<8x32xf32>, vector<32x128xf32>, vector<8x128xf32> -> vector<8x128xf32>
    %158 = arith.addf %155, %157 : vector<8x128xf32>
    %159 = vector.extract_strided_slice %158 {offsets = [0, 0], sizes = [8, 96], strides = [1, 1]} : vector<8x128xf32> to vector<8x96xf32>
    %160 = arith.negf %159 : vector<8x96xf32>
    %161 = math.exp %160 : vector<8x96xf32>
    %cst_82 = arith.constant 1.000000e+00 : f32
    %162 = vector.broadcast %cst_82 : f32 to vector<8x96xf32>
    %163 = arith.addf %162, %161 : vector<8x96xf32>
    %164 = arith.divf %162, %163 : vector<8x96xf32>
    %165 = vector.extract_strided_slice %158 {offsets = [0, 96], sizes = [8, 32], strides = [1, 1]} : vector<8x128xf32> to vector<8x32xf32>
    %166 = math.tanh %165 : vector<8x32xf32>
    %167 = vector.extract_strided_slice %164 {offsets = [0, 32], sizes = [8, 32], strides = [1, 1]} : vector<8x96xf32> to vector<8x32xf32>
    %c0_83 = arith.constant 0 : index
    %c0_84 = arith.constant 0 : index
    %168 = vector.load %arg4[%c0_83, %c0_84] : memref<8x32xf32, #tpu.memory_space<vmem>>, vector<8x32xf32>
    %169 = arith.mulf %167, %168 : vector<8x32xf32>
    %170 = vector.extract_strided_slice %164 {offsets = [0, 0], sizes = [8, 32], strides = [1, 1]} : vector<8x96xf32> to vector<8x32xf32>
    %171 = arith.mulf %170, %166 : vector<8x32xf32>
    %172 = arith.addf %169, %171 : vector<8x32xf32>
    %173 = vector.extract_strided_slice %164 {offsets = [0, 64], sizes = [8, 32], strides = [1, 1]} : vector<8x96xf32> to vector<8x32xf32>
    %174 = math.tanh %172 : vector<8x32xf32>
    %175 = arith.mulf %173, %174 : vector<8x32xf32>
    %c0_85 = arith.constant 0 : index
    %c0_86 = arith.constant 0 : index
    %176 = vector.load %arg4[%c0_85, %c0_86] : memref<8x32xf32, #tpu.memory_space<vmem>>, vector<8x32xf32>
    tpu.vector_store %arg4[%c0_85, %c0_86], %172 {strides = array<i32>} : memref<8x32xf32, #tpu.memory_space<vmem>>, vector<8x32xf32>,
    %c0_87 = arith.constant 0 : index
    %c0_88 = arith.constant 0 : index
    %177 = vector.load %arg3[%c0_87, %c0_88] : memref<8x32xf32, #tpu.memory_space<vmem>>, vector<8x32xf32>
    tpu.vector_store %arg3[%c0_87, %c0_88], %175 {strides = array<i32>} : memref<8x32xf32, #tpu.memory_space<vmem>>, vector<8x32xf32>,
    %178 = arith.index_cast %153 : i32 to index
    %c0_89 = arith.constant 0 : index
    %179 = vector.load %arg5[%178, %c0_89] : memref<64x32xf32, #tpu.memory_space<vmem>>, vector<8x32xf32>
    tpu.vector_store %arg5[%178, %c0_89], %175 {strides = array<i32>} : memref<64x32xf32, #tpu.memory_space<vmem>>, vector<8x32xf32>,
    %c6_i32 = arith.constant 6 : i32
    %c8_i32_90 = arith.constant 8 : i32
    %180 = arith.muli %c6_i32, %c8_i32_90 : i32
    %181 = tpu.assume_multiple %180, 8 : i32
    %182 = arith.index_cast %181 : i32 to index
    %c0_91 = arith.constant 0 : index
    %183 = vector.load %arg6[%182, %c0_91] : memref<64x128xf32, #tpu.memory_space<vmem>>, vector<8x128xf32>
    %c0_92 = arith.constant 0 : index
    %c0_93 = arith.constant 0 : index
    %184 = vector.load %arg3[%c0_92, %c0_93] : memref<8x32xf32, #tpu.memory_space<vmem>>, vector<8x32xf32>
    %cst_94 = arith.constant dense<0.000000e+00> : vector<8x128xf32>
    %185 = tpu.matmul %184, %1, %cst_94 {dimension_numbers = #tpu.dot_dimension_numbers<[1], [0], [0], [1], [0, 0, 1, 1], [], []>} : vector<8x32xf32>, vector<32x128xf32>, vector<8x128xf32> -> vector<8x128xf32>
    %186 = arith.addf %183, %185 : vector<8x128xf32>
    %187 = vector.extract_strided_slice %186 {offsets = [0, 0], sizes = [8, 96], strides = [1, 1]} : vector<8x128xf32> to vector<8x96xf32>
    %188 = arith.negf %187 : vector<8x96xf32>
    %189 = math.exp %188 : vector<8x96xf32>
    %cst_95 = arith.constant 1.000000e+00 : f32
    %190 = vector.broadcast %cst_95 : f32 to vector<8x96xf32>
    %191 = arith.addf %190, %189 : vector<8x96xf32>
    %192 = arith.divf %190, %191 : vector<8x96xf32>
    %193 = vector.extract_strided_slice %186 {offsets = [0, 96], sizes = [8, 32], strides = [1, 1]} : vector<8x128xf32> to vector<8x32xf32>
    %194 = math.tanh %193 : vector<8x32xf32>
    %195 = vector.extract_strided_slice %192 {offsets = [0, 32], sizes = [8, 32], strides = [1, 1]} : vector<8x96xf32> to vector<8x32xf32>
    %c0_96 = arith.constant 0 : index
    %c0_97 = arith.constant 0 : index
    %196 = vector.load %arg4[%c0_96, %c0_97] : memref<8x32xf32, #tpu.memory_space<vmem>>, vector<8x32xf32>
    %197 = arith.mulf %195, %196 : vector<8x32xf32>
    %198 = vector.extract_strided_slice %192 {offsets = [0, 0], sizes = [8, 32], strides = [1, 1]} : vector<8x96xf32> to vector<8x32xf32>
    %199 = arith.mulf %198, %194 : vector<8x32xf32>
    %200 = arith.addf %197, %199 : vector<8x32xf32>
    %201 = vector.extract_strided_slice %192 {offsets = [0, 64], sizes = [8, 32], strides = [1, 1]} : vector<8x96xf32> to vector<8x32xf32>
    %202 = math.tanh %200 : vector<8x32xf32>
    %203 = arith.mulf %201, %202 : vector<8x32xf32>
    %c0_98 = arith.constant 0 : index
    %c0_99 = arith.constant 0 : index
    %204 = vector.load %arg4[%c0_98, %c0_99] : memref<8x32xf32, #tpu.memory_space<vmem>>, vector<8x32xf32>
    tpu.vector_store %arg4[%c0_98, %c0_99], %200 {strides = array<i32>} : memref<8x32xf32, #tpu.memory_space<vmem>>, vector<8x32xf32>,
    %c0_100 = arith.constant 0 : index
    %c0_101 = arith.constant 0 : index
    %205 = vector.load %arg3[%c0_100, %c0_101] : memref<8x32xf32, #tpu.memory_space<vmem>>, vector<8x32xf32>
    tpu.vector_store %arg3[%c0_100, %c0_101], %203 {strides = array<i32>} : memref<8x32xf32, #tpu.memory_space<vmem>>, vector<8x32xf32>,
    %206 = arith.index_cast %181 : i32 to index
    %c0_102 = arith.constant 0 : index
    %207 = vector.load %arg5[%206, %c0_102] : memref<64x32xf32, #tpu.memory_space<vmem>>, vector<8x32xf32>
    tpu.vector_store %arg5[%206, %c0_102], %203 {strides = array<i32>} : memref<64x32xf32, #tpu.memory_space<vmem>>, vector<8x32xf32>,
    %c7_i32 = arith.constant 7 : i32
    %c8_i32_103 = arith.constant 8 : i32
    %208 = arith.muli %c7_i32, %c8_i32_103 : i32
    %209 = tpu.assume_multiple %208, 8 : i32
    %210 = arith.index_cast %209 : i32 to index
    %c0_104 = arith.constant 0 : index
    %211 = vector.load %arg6[%210, %c0_104] : memref<64x128xf32, #tpu.memory_space<vmem>>, vector<8x128xf32>
    %c0_105 = arith.constant 0 : index
    %c0_106 = arith.constant 0 : index
    %212 = vector.load %arg3[%c0_105, %c0_106] : memref<8x32xf32, #tpu.memory_space<vmem>>, vector<8x32xf32>
    %cst_107 = arith.constant dense<0.000000e+00> : vector<8x128xf32>
    %213 = tpu.matmul %212, %1, %cst_107 {dimension_numbers = #tpu.dot_dimension_numbers<[1], [0], [0], [1], [0, 0, 1, 1], [], []>} : vector<8x32xf32>, vector<32x128xf32>, vector<8x128xf32> -> vector<8x128xf32>
    %214 = arith.addf %211, %213 : vector<8x128xf32>
    %215 = vector.extract_strided_slice %214 {offsets = [0, 0], sizes = [8, 96], strides = [1, 1]} : vector<8x128xf32> to vector<8x96xf32>
    %216 = arith.negf %215 : vector<8x96xf32>
    %217 = math.exp %216 : vector<8x96xf32>
    %cst_108 = arith.constant 1.000000e+00 : f32
    %218 = vector.broadcast %cst_108 : f32 to vector<8x96xf32>
    %219 = arith.addf %218, %217 : vector<8x96xf32>
    %220 = arith.divf %218, %219 : vector<8x96xf32>
    %221 = vector.extract_strided_slice %214 {offsets = [0, 96], sizes = [8, 32], strides = [1, 1]} : vector<8x128xf32> to vector<8x32xf32>
    %222 = math.tanh %221 : vector<8x32xf32>
    %223 = vector.extract_strided_slice %220 {offsets = [0, 32], sizes = [8, 32], strides = [1, 1]} : vector<8x96xf32> to vector<8x32xf32>
    %c0_109 = arith.constant 0 : index
    %c0_110 = arith.constant 0 : index
    %224 = vector.load %arg4[%c0_109, %c0_110] : memref<8x32xf32, #tpu.memory_space<vmem>>, vector<8x32xf32>
    %225 = arith.mulf %223, %224 : vector<8x32xf32>
    %226 = vector.extract_strided_slice %220 {offsets = [0, 0], sizes = [8, 32], strides = [1, 1]} : vector<8x96xf32> to vector<8x32xf32>
    %227 = arith.mulf %226, %222 : vector<8x32xf32>
    %228 = arith.addf %225, %227 : vector<8x32xf32>
    %229 = vector.extract_strided_slice %220 {offsets = [0, 64], sizes = [8, 32], strides = [1, 1]} : vector<8x96xf32> to vector<8x32xf32>
    %230 = math.tanh %228 : vector<8x32xf32>
    %231 = arith.mulf %229, %230 : vector<8x32xf32>
    %c0_111 = arith.constant 0 : index
    %c0_112 = arith.constant 0 : index
    %232 = vector.load %arg4[%c0_111, %c0_112] : memref<8x32xf32, #tpu.memory_space<vmem>>, vector<8x32xf32>
    tpu.vector_store %arg4[%c0_111, %c0_112], %228 {strides = array<i32>} : memref<8x32xf32, #tpu.memory_space<vmem>>, vector<8x32xf32>,
    %c0_113 = arith.constant 0 : index
    %c0_114 = arith.constant 0 : index
    %233 = vector.load %arg3[%c0_113, %c0_114] : memref<8x32xf32, #tpu.memory_space<vmem>>, vector<8x32xf32>
    tpu.vector_store %arg3[%c0_113, %c0_114], %231 {strides = array<i32>} : memref<8x32xf32, #tpu.memory_space<vmem>>, vector<8x32xf32>,
    %234 = arith.index_cast %209 : i32 to index
    %c0_115 = arith.constant 0 : index
    %235 = vector.load %arg5[%234, %c0_115] : memref<64x32xf32, #tpu.memory_space<vmem>>, vector<8x32xf32>
    tpu.vector_store %arg5[%234, %c0_115], %231 {strides = array<i32>} : memref<64x32xf32, #tpu.memory_space<vmem>>, vector<8x32xf32>,
    %c8_i32_116 = arith.constant 8 : i32
    %c48 = arith.constant 48 : index
    %c0_117 = arith.constant 0 : index
    %236 = vector.load %arg1[%c48, %c0_117] : memref<160x128xf32, #tpu.memory_space<vmem>>, vector<32x128xf32>
    %c80 = arith.constant 80 : index
    %c0_118 = arith.constant 0 : index
    %237 = vector.load %arg1[%c80, %c0_118] : memref<160x128xf32, #tpu.memory_space<vmem>>, vector<32x128xf32>
    %c112 = arith.constant 112 : index
    %c0_119 = arith.constant 0 : index
    %238 = vector.load %arg1[%c112, %c0_119] : memref<160x128xf32, #tpu.memory_space<vmem>>, vector<1x128xf32>
    %c0_120 = arith.constant 0 : index
    %c0_121 = arith.constant 0 : index
    %239 = vector.load %arg5[%c0_120, %c0_121] : memref<64x32xf32, #tpu.memory_space<vmem>>, vector<64x32xf32>
    %cst_122 = arith.constant dense<0.000000e+00> : vector<64x128xf32>
    %240 = tpu.matmul %239, %236, %cst_122 {dimension_numbers = #tpu.dot_dimension_numbers<[1], [0], [0], [1], [0, 0, 1, 1], [], []>} : vector<64x32xf32>, vector<32x128xf32>, vector<64x128xf32> -> vector<64x128xf32>
    %241 = vector.broadcast %238 : vector<1x128xf32> to vector<64x128xf32>
    %242 = arith.addf %240, %241 : vector<64x128xf32>
    %c0_123 = arith.constant 0 : index
    %c0_124 = arith.constant 0 : index
    %243 = vector.load %arg6[%c0_123, %c0_124] : memref<64x128xf32, #tpu.memory_space<vmem>>, vector<64x128xf32>
    tpu.vector_store %arg6[%c0_123, %c0_124], %242 {strides = array<i32>} : memref<64x128xf32, #tpu.memory_space<vmem>>, vector<64x128xf32>,
    %cst_125 = arith.constant 0.000000e+00 : f32
    %244 = vector.broadcast %cst_125 : f32 to vector<8x32xf32>
    %c0_126 = arith.constant 0 : index
    %c0_127 = arith.constant 0 : index
    %245 = vector.load %arg3[%c0_126, %c0_127] : memref<8x32xf32, #tpu.memory_space<vmem>>, vector<8x32xf32>
    tpu.vector_store %arg3[%c0_126, %c0_127], %244 {strides = array<i32>} : memref<8x32xf32, #tpu.memory_space<vmem>>, vector<8x32xf32>,
    %cst_128 = arith.constant 0.000000e+00 : f32
    %246 = vector.broadcast %cst_128 : f32 to vector<8x32xf32>
    %c0_129 = arith.constant 0 : index
    %c0_130 = arith.constant 0 : index
    %247 = vector.load %arg4[%c0_129, %c0_130] : memref<8x32xf32, #tpu.memory_space<vmem>>, vector<8x32xf32>
    tpu.vector_store %arg4[%c0_129, %c0_130], %246 {strides = array<i32>} : memref<8x32xf32, #tpu.memory_space<vmem>>, vector<8x32xf32>,
    %c0_i32_131 = arith.constant 0 : i32
    %c8_i32_132 = arith.constant 8 : i32
    %248 = arith.muli %c0_i32_131, %c8_i32_132 : i32
    %249 = tpu.assume_multiple %248, 8 : i32
    %250 = arith.index_cast %249 : i32 to index
    %c0_133 = arith.constant 0 : index
    %251 = vector.load %arg6[%250, %c0_133] : memref<64x128xf32, #tpu.memory_space<vmem>>, vector<8x128xf32>
    %c0_134 = arith.constant 0 : index
    %c0_135 = arith.constant 0 : index
    %252 = vector.load %arg3[%c0_134, %c0_135] : memref<8x32xf32, #tpu.memory_space<vmem>>, vector<8x32xf32>
    %cst_136 = arith.constant dense<0.000000e+00> : vector<8x128xf32>
    %253 = tpu.matmul %252, %237, %cst_136 {dimension_numbers = #tpu.dot_dimension_numbers<[1], [0], [0], [1], [0, 0, 1, 1], [], []>} : vector<8x32xf32>, vector<32x128xf32>, vector<8x128xf32> -> vector<8x128xf32>
    %254 = arith.addf %251, %253 : vector<8x128xf32>
    %255 = vector.extract_strided_slice %254 {offsets = [0, 0], sizes = [8, 96], strides = [1, 1]} : vector<8x128xf32> to vector<8x96xf32>
    %256 = arith.negf %255 : vector<8x96xf32>
    %257 = math.exp %256 : vector<8x96xf32>
    %cst_137 = arith.constant 1.000000e+00 : f32
    %258 = vector.broadcast %cst_137 : f32 to vector<8x96xf32>
    %259 = arith.addf %258, %257 : vector<8x96xf32>
    %260 = arith.divf %258, %259 : vector<8x96xf32>
    %261 = vector.extract_strided_slice %254 {offsets = [0, 96], sizes = [8, 32], strides = [1, 1]} : vector<8x128xf32> to vector<8x32xf32>
    %262 = math.tanh %261 : vector<8x32xf32>
    %263 = vector.extract_strided_slice %260 {offsets = [0, 32], sizes = [8, 32], strides = [1, 1]} : vector<8x96xf32> to vector<8x32xf32>
    %c0_138 = arith.constant 0 : index
    %c0_139 = arith.constant 0 : index
    %264 = vector.load %arg4[%c0_138, %c0_139] : memref<8x32xf32, #tpu.memory_space<vmem>>, vector<8x32xf32>
    %265 = arith.mulf %263, %264 : vector<8x32xf32>
    %266 = vector.extract_strided_slice %260 {offsets = [0, 0], sizes = [8, 32], strides = [1, 1]} : vector<8x96xf32> to vector<8x32xf32>
    %267 = arith.mulf %266, %262 : vector<8x32xf32>
    %268 = arith.addf %265, %267 : vector<8x32xf32>
    %269 = vector.extract_strided_slice %260 {offsets = [0, 64], sizes = [8, 32], strides = [1, 1]} : vector<8x96xf32> to vector<8x32xf32>
    %270 = math.tanh %268 : vector<8x32xf32>
    %271 = arith.mulf %269, %270 : vector<8x32xf32>
    %c0_140 = arith.constant 0 : index
    %c0_141 = arith.constant 0 : index
    %272 = vector.load %arg4[%c0_140, %c0_141] : memref<8x32xf32, #tpu.memory_space<vmem>>, vector<8x32xf32>
    tpu.vector_store %arg4[%c0_140, %c0_141], %268 {strides = array<i32>} : memref<8x32xf32, #tpu.memory_space<vmem>>, vector<8x32xf32>,
    %c0_142 = arith.constant 0 : index
    %c0_143 = arith.constant 0 : index
    %273 = vector.load %arg3[%c0_142, %c0_143] : memref<8x32xf32, #tpu.memory_space<vmem>>, vector<8x32xf32>
    tpu.vector_store %arg3[%c0_142, %c0_143], %271 {strides = array<i32>} : memref<8x32xf32, #tpu.memory_space<vmem>>, vector<8x32xf32>,
    %c1_i32_144 = arith.constant 1 : i32
    %c8_i32_145 = arith.constant 8 : i32
    %274 = arith.muli %c1_i32_144, %c8_i32_145 : i32
    %275 = tpu.assume_multiple %274, 8 : i32
    %276 = arith.index_cast %275 : i32 to index
    %c0_146 = arith.constant 0 : index
    %277 = vector.load %arg6[%276, %c0_146] : memref<64x128xf32, #tpu.memory_space<vmem>>, vector<8x128xf32>
    %c0_147 = arith.constant 0 : index
    %c0_148 = arith.constant 0 : index
    %278 = vector.load %arg3[%c0_147, %c0_148] : memref<8x32xf32, #tpu.memory_space<vmem>>, vector<8x32xf32>
    %cst_149 = arith.constant dense<0.000000e+00> : vector<8x128xf32>
    %279 = tpu.matmul %278, %237, %cst_149 {dimension_numbers = #tpu.dot_dimension_numbers<[1], [0], [0], [1], [0, 0, 1, 1], [], []>} : vector<8x32xf32>, vector<32x128xf32>, vector<8x128xf32> -> vector<8x128xf32>
    %280 = arith.addf %277, %279 : vector<8x128xf32>
    %281 = vector.extract_strided_slice %280 {offsets = [0, 0], sizes = [8, 96], strides = [1, 1]} : vector<8x128xf32> to vector<8x96xf32>
    %282 = arith.negf %281 : vector<8x96xf32>
    %283 = math.exp %282 : vector<8x96xf32>
    %cst_150 = arith.constant 1.000000e+00 : f32
    %284 = vector.broadcast %cst_150 : f32 to vector<8x96xf32>
    %285 = arith.addf %284, %283 : vector<8x96xf32>
    %286 = arith.divf %284, %285 : vector<8x96xf32>
    %287 = vector.extract_strided_slice %280 {offsets = [0, 96], sizes = [8, 32], strides = [1, 1]} : vector<8x128xf32> to vector<8x32xf32>
    %288 = math.tanh %287 : vector<8x32xf32>
    %289 = vector.extract_strided_slice %286 {offsets = [0, 32], sizes = [8, 32], strides = [1, 1]} : vector<8x96xf32> to vector<8x32xf32>
    %c0_151 = arith.constant 0 : index
    %c0_152 = arith.constant 0 : index
    %290 = vector.load %arg4[%c0_151, %c0_152] : memref<8x32xf32, #tpu.memory_space<vmem>>, vector<8x32xf32>
    %291 = arith.mulf %289, %290 : vector<8x32xf32>
    %292 = vector.extract_strided_slice %286 {offsets = [0, 0], sizes = [8, 32], strides = [1, 1]} : vector<8x96xf32> to vector<8x32xf32>
    %293 = arith.mulf %292, %288 : vector<8x32xf32>
    %294 = arith.addf %291, %293 : vector<8x32xf32>
    %295 = vector.extract_strided_slice %286 {offsets = [0, 64], sizes = [8, 32], strides = [1, 1]} : vector<8x96xf32> to vector<8x32xf32>
    %296 = math.tanh %294 : vector<8x32xf32>
    %297 = arith.mulf %295, %296 : vector<8x32xf32>
    %c0_153 = arith.constant 0 : index
    %c0_154 = arith.constant 0 : index
    %298 = vector.load %arg4[%c0_153, %c0_154] : memref<8x32xf32, #tpu.memory_space<vmem>>, vector<8x32xf32>
    tpu.vector_store %arg4[%c0_153, %c0_154], %294 {strides = array<i32>} : memref<8x32xf32, #tpu.memory_space<vmem>>, vector<8x32xf32>,
    %c0_155 = arith.constant 0 : index
    %c0_156 = arith.constant 0 : index
    %299 = vector.load %arg3[%c0_155, %c0_156] : memref<8x32xf32, #tpu.memory_space<vmem>>, vector<8x32xf32>
    tpu.vector_store %arg3[%c0_155, %c0_156], %297 {strides = array<i32>} : memref<8x32xf32, #tpu.memory_space<vmem>>, vector<8x32xf32>,
    %c2_i32_157 = arith.constant 2 : i32
    %c8_i32_158 = arith.constant 8 : i32
    %300 = arith.muli %c2_i32_157, %c8_i32_158 : i32
    %301 = tpu.assume_multiple %300, 8 : i32
    %302 = arith.index_cast %301 : i32 to index
    %c0_159 = arith.constant 0 : index
    %303 = vector.load %arg6[%302, %c0_159] : memref<64x128xf32, #tpu.memory_space<vmem>>, vector<8x128xf32>
    %c0_160 = arith.constant 0 : index
    %c0_161 = arith.constant 0 : index
    %304 = vector.load %arg3[%c0_160, %c0_161] : memref<8x32xf32, #tpu.memory_space<vmem>>, vector<8x32xf32>
    %cst_162 = arith.constant dense<0.000000e+00> : vector<8x128xf32>
    %305 = tpu.matmul %304, %237, %cst_162 {dimension_numbers = #tpu.dot_dimension_numbers<[1], [0], [0], [1], [0, 0, 1, 1], [], []>} : vector<8x32xf32>, vector<32x128xf32>, vector<8x128xf32> -> vector<8x128xf32>
    %306 = arith.addf %303, %305 : vector<8x128xf32>
    %307 = vector.extract_strided_slice %306 {offsets = [0, 0], sizes = [8, 96], strides = [1, 1]} : vector<8x128xf32> to vector<8x96xf32>
    %308 = arith.negf %307 : vector<8x96xf32>
    %309 = math.exp %308 : vector<8x96xf32>
    %cst_163 = arith.constant 1.000000e+00 : f32
    %310 = vector.broadcast %cst_163 : f32 to vector<8x96xf32>
    %311 = arith.addf %310, %309 : vector<8x96xf32>
    %312 = arith.divf %310, %311 : vector<8x96xf32>
    %313 = vector.extract_strided_slice %306 {offsets = [0, 96], sizes = [8, 32], strides = [1, 1]} : vector<8x128xf32> to vector<8x32xf32>
    %314 = math.tanh %313 : vector<8x32xf32>
    %315 = vector.extract_strided_slice %312 {offsets = [0, 32], sizes = [8, 32], strides = [1, 1]} : vector<8x96xf32> to vector<8x32xf32>
    %c0_164 = arith.constant 0 : index
    %c0_165 = arith.constant 0 : index
    %316 = vector.load %arg4[%c0_164, %c0_165] : memref<8x32xf32, #tpu.memory_space<vmem>>, vector<8x32xf32>
    %317 = arith.mulf %315, %316 : vector<8x32xf32>
    %318 = vector.extract_strided_slice %312 {offsets = [0, 0], sizes = [8, 32], strides = [1, 1]} : vector<8x96xf32> to vector<8x32xf32>
    %319 = arith.mulf %318, %314 : vector<8x32xf32>
    %320 = arith.addf %317, %319 : vector<8x32xf32>
    %321 = vector.extract_strided_slice %312 {offsets = [0, 64], sizes = [8, 32], strides = [1, 1]} : vector<8x96xf32> to vector<8x32xf32>
    %322 = math.tanh %320 : vector<8x32xf32>
    %323 = arith.mulf %321, %322 : vector<8x32xf32>
    %c0_166 = arith.constant 0 : index
    %c0_167 = arith.constant 0 : index
    %324 = vector.load %arg4[%c0_166, %c0_167] : memref<8x32xf32, #tpu.memory_space<vmem>>, vector<8x32xf32>
    tpu.vector_store %arg4[%c0_166, %c0_167], %320 {strides = array<i32>} : memref<8x32xf32, #tpu.memory_space<vmem>>, vector<8x32xf32>,
    %c0_168 = arith.constant 0 : index
    %c0_169 = arith.constant 0 : index
    %325 = vector.load %arg3[%c0_168, %c0_169] : memref<8x32xf32, #tpu.memory_space<vmem>>, vector<8x32xf32>
    tpu.vector_store %arg3[%c0_168, %c0_169], %323 {strides = array<i32>} : memref<8x32xf32, #tpu.memory_space<vmem>>, vector<8x32xf32>,
    %c3_i32_170 = arith.constant 3 : i32
    %c8_i32_171 = arith.constant 8 : i32
    %326 = arith.muli %c3_i32_170, %c8_i32_171 : i32
    %327 = tpu.assume_multiple %326, 8 : i32
    %328 = arith.index_cast %327 : i32 to index
    %c0_172 = arith.constant 0 : index
    %329 = vector.load %arg6[%328, %c0_172] : memref<64x128xf32, #tpu.memory_space<vmem>>, vector<8x128xf32>
    %c0_173 = arith.constant 0 : index
    %c0_174 = arith.constant 0 : index
    %330 = vector.load %arg3[%c0_173, %c0_174] : memref<8x32xf32, #tpu.memory_space<vmem>>, vector<8x32xf32>
    %cst_175 = arith.constant dense<0.000000e+00> : vector<8x128xf32>
    %331 = tpu.matmul %330, %237, %cst_175 {dimension_numbers = #tpu.dot_dimension_numbers<[1], [0], [0], [1], [0, 0, 1, 1], [], []>} : vector<8x32xf32>, vector<32x128xf32>, vector<8x128xf32> -> vector<8x128xf32>
    %332 = arith.addf %329, %331 : vector<8x128xf32>
    %333 = vector.extract_strided_slice %332 {offsets = [0, 0], sizes = [8, 96], strides = [1, 1]} : vector<8x128xf32> to vector<8x96xf32>
    %334 = arith.negf %333 : vector<8x96xf32>
    %335 = math.exp %334 : vector<8x96xf32>
    %cst_176 = arith.constant 1.000000e+00 : f32
    %336 = vector.broadcast %cst_176 : f32 to vector<8x96xf32>
    %337 = arith.addf %336, %335 : vector<8x96xf32>
    %338 = arith.divf %336, %337 : vector<8x96xf32>
    %339 = vector.extract_strided_slice %332 {offsets = [0, 96], sizes = [8, 32], strides = [1, 1]} : vector<8x128xf32> to vector<8x32xf32>
    %340 = math.tanh %339 : vector<8x32xf32>
    %341 = vector.extract_strided_slice %338 {offsets = [0, 32], sizes = [8, 32], strides = [1, 1]} : vector<8x96xf32> to vector<8x32xf32>
    %c0_177 = arith.constant 0 : index
    %c0_178 = arith.constant 0 : index
    %342 = vector.load %arg4[%c0_177, %c0_178] : memref<8x32xf32, #tpu.memory_space<vmem>>, vector<8x32xf32>
    %343 = arith.mulf %341, %342 : vector<8x32xf32>
    %344 = vector.extract_strided_slice %338 {offsets = [0, 0], sizes = [8, 32], strides = [1, 1]} : vector<8x96xf32> to vector<8x32xf32>
    %345 = arith.mulf %344, %340 : vector<8x32xf32>
    %346 = arith.addf %343, %345 : vector<8x32xf32>
    %347 = vector.extract_strided_slice %338 {offsets = [0, 64], sizes = [8, 32], strides = [1, 1]} : vector<8x96xf32> to vector<8x32xf32>
    %348 = math.tanh %346 : vector<8x32xf32>
    %349 = arith.mulf %347, %348 : vector<8x32xf32>
    %c0_179 = arith.constant 0 : index
    %c0_180 = arith.constant 0 : index
    %350 = vector.load %arg4[%c0_179, %c0_180] : memref<8x32xf32, #tpu.memory_space<vmem>>, vector<8x32xf32>
    tpu.vector_store %arg4[%c0_179, %c0_180], %346 {strides = array<i32>} : memref<8x32xf32, #tpu.memory_space<vmem>>, vector<8x32xf32>,
    %c0_181 = arith.constant 0 : index
    %c0_182 = arith.constant 0 : index
    %351 = vector.load %arg3[%c0_181, %c0_182] : memref<8x32xf32, #tpu.memory_space<vmem>>, vector<8x32xf32>
    tpu.vector_store %arg3[%c0_181, %c0_182], %349 {strides = array<i32>} : memref<8x32xf32, #tpu.memory_space<vmem>>, vector<8x32xf32>,
    %c4_i32_183 = arith.constant 4 : i32
    %c8_i32_184 = arith.constant 8 : i32
    %352 = arith.muli %c4_i32_183, %c8_i32_184 : i32
    %353 = tpu.assume_multiple %352, 8 : i32
    %354 = arith.index_cast %353 : i32 to index
    %c0_185 = arith.constant 0 : index
    %355 = vector.load %arg6[%354, %c0_185] : memref<64x128xf32, #tpu.memory_space<vmem>>, vector<8x128xf32>
    %c0_186 = arith.constant 0 : index
    %c0_187 = arith.constant 0 : index
    %356 = vector.load %arg3[%c0_186, %c0_187] : memref<8x32xf32, #tpu.memory_space<vmem>>, vector<8x32xf32>
    %cst_188 = arith.constant dense<0.000000e+00> : vector<8x128xf32>
    %357 = tpu.matmul %356, %237, %cst_188 {dimension_numbers = #tpu.dot_dimension_numbers<[1], [0], [0], [1], [0, 0, 1, 1], [], []>} : vector<8x32xf32>, vector<32x128xf32>, vector<8x128xf32> -> vector<8x128xf32>
    %358 = arith.addf %355, %357 : vector<8x128xf32>
    %359 = vector.extract_strided_slice %358 {offsets = [0, 0], sizes = [8, 96], strides = [1, 1]} : vector<8x128xf32> to vector<8x96xf32>
    %360 = arith.negf %359 : vector<8x96xf32>
    %361 = math.exp %360 : vector<8x96xf32>
    %cst_189 = arith.constant 1.000000e+00 : f32
    %362 = vector.broadcast %cst_189 : f32 to vector<8x96xf32>
    %363 = arith.addf %362, %361 : vector<8x96xf32>
    %364 = arith.divf %362, %363 : vector<8x96xf32>
    %365 = vector.extract_strided_slice %358 {offsets = [0, 96], sizes = [8, 32], strides = [1, 1]} : vector<8x128xf32> to vector<8x32xf32>
    %366 = math.tanh %365 : vector<8x32xf32>
    %367 = vector.extract_strided_slice %364 {offsets = [0, 32], sizes = [8, 32], strides = [1, 1]} : vector<8x96xf32> to vector<8x32xf32>
    %c0_190 = arith.constant 0 : index
    %c0_191 = arith.constant 0 : index
    %368 = vector.load %arg4[%c0_190, %c0_191] : memref<8x32xf32, #tpu.memory_space<vmem>>, vector<8x32xf32>
    %369 = arith.mulf %367, %368 : vector<8x32xf32>
    %370 = vector.extract_strided_slice %364 {offsets = [0, 0], sizes = [8, 32], strides = [1, 1]} : vector<8x96xf32> to vector<8x32xf32>
    %371 = arith.mulf %370, %366 : vector<8x32xf32>
    %372 = arith.addf %369, %371 : vector<8x32xf32>
    %373 = vector.extract_strided_slice %364 {offsets = [0, 64], sizes = [8, 32], strides = [1, 1]} : vector<8x96xf32> to vector<8x32xf32>
    %374 = math.tanh %372 : vector<8x32xf32>
    %375 = arith.mulf %373, %374 : vector<8x32xf32>
    %c0_192 = arith.constant 0 : index
    %c0_193 = arith.constant 0 : index
    %376 = vector.load %arg4[%c0_192, %c0_193] : memref<8x32xf32, #tpu.memory_space<vmem>>, vector<8x32xf32>
    tpu.vector_store %arg4[%c0_192, %c0_193], %372 {strides = array<i32>} : memref<8x32xf32, #tpu.memory_space<vmem>>, vector<8x32xf32>,
    %c0_194 = arith.constant 0 : index
    %c0_195 = arith.constant 0 : index
    %377 = vector.load %arg3[%c0_194, %c0_195] : memref<8x32xf32, #tpu.memory_space<vmem>>, vector<8x32xf32>
    tpu.vector_store %arg3[%c0_194, %c0_195], %375 {strides = array<i32>} : memref<8x32xf32, #tpu.memory_space<vmem>>, vector<8x32xf32>,
    %c5_i32_196 = arith.constant 5 : i32
    %c8_i32_197 = arith.constant 8 : i32
    %378 = arith.muli %c5_i32_196, %c8_i32_197 : i32
    %379 = tpu.assume_multiple %378, 8 : i32
    %380 = arith.index_cast %379 : i32 to index
    %c0_198 = arith.constant 0 : index
    %381 = vector.load %arg6[%380, %c0_198] : memref<64x128xf32, #tpu.memory_space<vmem>>, vector<8x128xf32>
    %c0_199 = arith.constant 0 : index
    %c0_200 = arith.constant 0 : index
    %382 = vector.load %arg3[%c0_199, %c0_200] : memref<8x32xf32, #tpu.memory_space<vmem>>, vector<8x32xf32>
    %cst_201 = arith.constant dense<0.000000e+00> : vector<8x128xf32>
    %383 = tpu.matmul %382, %237, %cst_201 {dimension_numbers = #tpu.dot_dimension_numbers<[1], [0], [0], [1], [0, 0, 1, 1], [], []>} : vector<8x32xf32>, vector<32x128xf32>, vector<8x128xf32> -> vector<8x128xf32>
    %384 = arith.addf %381, %383 : vector<8x128xf32>
    %385 = vector.extract_strided_slice %384 {offsets = [0, 0], sizes = [8, 96], strides = [1, 1]} : vector<8x128xf32> to vector<8x96xf32>
    %386 = arith.negf %385 : vector<8x96xf32>
    %387 = math.exp %386 : vector<8x96xf32>
    %cst_202 = arith.constant 1.000000e+00 : f32
    %388 = vector.broadcast %cst_202 : f32 to vector<8x96xf32>
    %389 = arith.addf %388, %387 : vector<8x96xf32>
    %390 = arith.divf %388, %389 : vector<8x96xf32>
    %391 = vector.extract_strided_slice %384 {offsets = [0, 96], sizes = [8, 32], strides = [1, 1]} : vector<8x128xf32> to vector<8x32xf32>
    %392 = math.tanh %391 : vector<8x32xf32>
    %393 = vector.extract_strided_slice %390 {offsets = [0, 32], sizes = [8, 32], strides = [1, 1]} : vector<8x96xf32> to vector<8x32xf32>
    %c0_203 = arith.constant 0 : index
    %c0_204 = arith.constant 0 : index
    %394 = vector.load %arg4[%c0_203, %c0_204] : memref<8x32xf32, #tpu.memory_space<vmem>>, vector<8x32xf32>
    %395 = arith.mulf %393, %394 : vector<8x32xf32>
    %396 = vector.extract_strided_slice %390 {offsets = [0, 0], sizes = [8, 32], strides = [1, 1]} : vector<8x96xf32> to vector<8x32xf32>
    %397 = arith.mulf %396, %392 : vector<8x32xf32>
    %398 = arith.addf %395, %397 : vector<8x32xf32>
    %399 = vector.extract_strided_slice %390 {offsets = [0, 64], sizes = [8, 32], strides = [1, 1]} : vector<8x96xf32> to vector<8x32xf32>
    %400 = math.tanh %398 : vector<8x32xf32>
    %401 = arith.mulf %399, %400 : vector<8x32xf32>
    %c0_205 = arith.constant 0 : index
    %c0_206 = arith.constant 0 : index
    %402 = vector.load %arg4[%c0_205, %c0_206] : memref<8x32xf32, #tpu.memory_space<vmem>>, vector<8x32xf32>
    tpu.vector_store %arg4[%c0_205, %c0_206], %398 {strides = array<i32>} : memref<8x32xf32, #tpu.memory_space<vmem>>, vector<8x32xf32>,
    %c0_207 = arith.constant 0 : index
    %c0_208 = arith.constant 0 : index
    %403 = vector.load %arg3[%c0_207, %c0_208] : memref<8x32xf32, #tpu.memory_space<vmem>>, vector<8x32xf32>
    tpu.vector_store %arg3[%c0_207, %c0_208], %401 {strides = array<i32>} : memref<8x32xf32, #tpu.memory_space<vmem>>, vector<8x32xf32>,
    %c6_i32_209 = arith.constant 6 : i32
    %c8_i32_210 = arith.constant 8 : i32
    %404 = arith.muli %c6_i32_209, %c8_i32_210 : i32
    %405 = tpu.assume_multiple %404, 8 : i32
    %406 = arith.index_cast %405 : i32 to index
    %c0_211 = arith.constant 0 : index
    %407 = vector.load %arg6[%406, %c0_211] : memref<64x128xf32, #tpu.memory_space<vmem>>, vector<8x128xf32>
    %c0_212 = arith.constant 0 : index
    %c0_213 = arith.constant 0 : index
    %408 = vector.load %arg3[%c0_212, %c0_213] : memref<8x32xf32, #tpu.memory_space<vmem>>, vector<8x32xf32>
    %cst_214 = arith.constant dense<0.000000e+00> : vector<8x128xf32>
    %409 = tpu.matmul %408, %237, %cst_214 {dimension_numbers = #tpu.dot_dimension_numbers<[1], [0], [0], [1], [0, 0, 1, 1], [], []>} : vector<8x32xf32>, vector<32x128xf32>, vector<8x128xf32> -> vector<8x128xf32>
    %410 = arith.addf %407, %409 : vector<8x128xf32>
    %411 = vector.extract_strided_slice %410 {offsets = [0, 0], sizes = [8, 96], strides = [1, 1]} : vector<8x128xf32> to vector<8x96xf32>
    %412 = arith.negf %411 : vector<8x96xf32>
    %413 = math.exp %412 : vector<8x96xf32>
    %cst_215 = arith.constant 1.000000e+00 : f32
    %414 = vector.broadcast %cst_215 : f32 to vector<8x96xf32>
    %415 = arith.addf %414, %413 : vector<8x96xf32>
    %416 = arith.divf %414, %415 : vector<8x96xf32>
    %417 = vector.extract_strided_slice %410 {offsets = [0, 96], sizes = [8, 32], strides = [1, 1]} : vector<8x128xf32> to vector<8x32xf32>
    %418 = math.tanh %417 : vector<8x32xf32>
    %419 = vector.extract_strided_slice %416 {offsets = [0, 32], sizes = [8, 32], strides = [1, 1]} : vector<8x96xf32> to vector<8x32xf32>
    %c0_216 = arith.constant 0 : index
    %c0_217 = arith.constant 0 : index
    %420 = vector.load %arg4[%c0_216, %c0_217] : memref<8x32xf32, #tpu.memory_space<vmem>>, vector<8x32xf32>
    %421 = arith.mulf %419, %420 : vector<8x32xf32>
    %422 = vector.extract_strided_slice %416 {offsets = [0, 0], sizes = [8, 32], strides = [1, 1]} : vector<8x96xf32> to vector<8x32xf32>
    %423 = arith.mulf %422, %418 : vector<8x32xf32>
    %424 = arith.addf %421, %423 : vector<8x32xf32>
    %425 = vector.extract_strided_slice %416 {offsets = [0, 64], sizes = [8, 32], strides = [1, 1]} : vector<8x96xf32> to vector<8x32xf32>
    %426 = math.tanh %424 : vector<8x32xf32>
    %427 = arith.mulf %425, %426 : vector<8x32xf32>
    %c0_218 = arith.constant 0 : index
    %c0_219 = arith.constant 0 : index
    %428 = vector.load %arg4[%c0_218, %c0_219] : memref<8x32xf32, #tpu.memory_space<vmem>>, vector<8x32xf32>
    tpu.vector_store %arg4[%c0_218, %c0_219], %424 {strides = array<i32>} : memref<8x32xf32, #tpu.memory_space<vmem>>, vector<8x32xf32>,
    %c0_220 = arith.constant 0 : index
    %c0_221 = arith.constant 0 : index
    %429 = vector.load %arg3[%c0_220, %c0_221] : memref<8x32xf32, #tpu.memory_space<vmem>>, vector<8x32xf32>
    tpu.vector_store %arg3[%c0_220, %c0_221], %427 {strides = array<i32>} : memref<8x32xf32, #tpu.memory_space<vmem>>, vector<8x32xf32>,
    %c7_i32_222 = arith.constant 7 : i32
    %c8_i32_223 = arith.constant 8 : i32
    %430 = arith.muli %c7_i32_222, %c8_i32_223 : i32
    %431 = tpu.assume_multiple %430, 8 : i32
    %432 = arith.index_cast %431 : i32 to index
    %c0_224 = arith.constant 0 : index
    %433 = vector.load %arg6[%432, %c0_224] : memref<64x128xf32, #tpu.memory_space<vmem>>, vector<8x128xf32>
    %c0_225 = arith.constant 0 : index
    %c0_226 = arith.constant 0 : index
    %434 = vector.load %arg3[%c0_225, %c0_226] : memref<8x32xf32, #tpu.memory_space<vmem>>, vector<8x32xf32>
    %cst_227 = arith.constant dense<0.000000e+00> : vector<8x128xf32>
    %435 = tpu.matmul %434, %237, %cst_227 {dimension_numbers = #tpu.dot_dimension_numbers<[1], [0], [0], [1], [0, 0, 1, 1], [], []>} : vector<8x32xf32>, vector<32x128xf32>, vector<8x128xf32> -> vector<8x128xf32>
    %436 = arith.addf %433, %435 : vector<8x128xf32>
    %437 = vector.extract_strided_slice %436 {offsets = [0, 0], sizes = [8, 96], strides = [1, 1]} : vector<8x128xf32> to vector<8x96xf32>
    %438 = arith.negf %437 : vector<8x96xf32>
    %439 = math.exp %438 : vector<8x96xf32>
    %cst_228 = arith.constant 1.000000e+00 : f32
    %440 = vector.broadcast %cst_228 : f32 to vector<8x96xf32>
    %441 = arith.addf %440, %439 : vector<8x96xf32>
    %442 = arith.divf %440, %441 : vector<8x96xf32>
    %443 = vector.extract_strided_slice %436 {offsets = [0, 96], sizes = [8, 32], strides = [1, 1]} : vector<8x128xf32> to vector<8x32xf32>
    %444 = math.tanh %443 : vector<8x32xf32>
    %445 = vector.extract_strided_slice %442 {offsets = [0, 32], sizes = [8, 32], strides = [1, 1]} : vector<8x96xf32> to vector<8x32xf32>
    %c0_229 = arith.constant 0 : index
    %c0_230 = arith.constant 0 : index
    %446 = vector.load %arg4[%c0_229, %c0_230] : memref<8x32xf32, #tpu.memory_space<vmem>>, vector<8x32xf32>
    %447 = arith.mulf %445, %446 : vector<8x32xf32>
    %448 = vector.extract_strided_slice %442 {offsets = [0, 0], sizes = [8, 32], strides = [1, 1]} : vector<8x96xf32> to vector<8x32xf32>
    %449 = arith.mulf %448, %444 : vector<8x32xf32>
    %450 = arith.addf %447, %449 : vector<8x32xf32>
    %451 = vector.extract_strided_slice %442 {offsets = [0, 64], sizes = [8, 32], strides = [1, 1]} : vector<8x96xf32> to vector<8x32xf32>
    %452 = math.tanh %450 : vector<8x32xf32>
    %453 = arith.mulf %451, %452 : vector<8x32xf32>
    %c0_231 = arith.constant 0 : index
    %c0_232 = arith.constant 0 : index
    %454 = vector.load %arg4[%c0_231, %c0_232] : memref<8x32xf32, #tpu.memory_space<vmem>>, vector<8x32xf32>
    tpu.vector_store %arg4[%c0_231, %c0_232], %450 {strides = array<i32>} : memref<8x32xf32, #tpu.memory_space<vmem>>, vector<8x32xf32>,
    %c0_233 = arith.constant 0 : index
    %c0_234 = arith.constant 0 : index
    %455 = vector.load %arg3[%c0_233, %c0_234] : memref<8x32xf32, #tpu.memory_space<vmem>>, vector<8x32xf32>
    tpu.vector_store %arg3[%c0_233, %c0_234], %453 {strides = array<i32>} : memref<8x32xf32, #tpu.memory_space<vmem>>, vector<8x32xf32>,
    %c8_i32_235 = arith.constant 8 : i32
    %c120 = arith.constant 120 : index
    %c0_236 = arith.constant 0 : index
    %456 = vector.load %arg1[%c120, %c0_236] : memref<160x128xf32, #tpu.memory_space<vmem>>, vector<32x128xf32>
    %c152 = arith.constant 152 : index
    %c0_237 = arith.constant 0 : index
    %457 = vector.load %arg1[%c152, %c0_237] : memref<160x128xf32, #tpu.memory_space<vmem>>, vector<1x128xf32>
    %c0_238 = arith.constant 0 : index
    %c0_239 = arith.constant 0 : index
    %458 = vector.load %arg3[%c0_238, %c0_239] : memref<8x32xf32, #tpu.memory_space<vmem>>, vector<8x32xf32>
    %cst_240 = arith.constant dense<0.000000e+00> : vector<8x128xf32>
    %459 = tpu.matmul %458, %456, %cst_240 {dimension_numbers = #tpu.dot_dimension_numbers<[1], [0], [0], [1], [0, 0, 1, 1], [], []>} : vector<8x32xf32>, vector<32x128xf32>, vector<8x128xf32> -> vector<8x128xf32>
    %460 = vector.broadcast %457 : vector<1x128xf32> to vector<8x128xf32>
    %461 = arith.addf %459, %460 : vector<8x128xf32>
    %c0_241 = arith.constant 0 : index
    %c0_242 = arith.constant 0 : index
    %462 = vector.load %arg2[%c0_241, %c0_242] : memref<8x128xf32, #tpu.memory_space<vmem>>, vector<8x128xf32>
    tpu.vector_store %arg2[%c0_241, %c0_242], %461 {strides = array<i32>} : memref<8x128xf32, #tpu.memory_space<vmem>>, vector<8x128xf32>,
    return
  }
}

</mosaic_0001>

<bundles_post_ra>
// kernel: tpu_custom_call.1
= control target key start
LH: loop header
LB: loop body
LE: loop exit
PB: predicated region body
PF: predicated region fallthrough
CT: control target
= control target key end

     0   :  { %7 = vsyncpa [#allocation7], 0  ;;  %s2104_s0 = inlined_call_operand.vmem [shape: f32[64,8], index: 0, kind: input, shape index: {}]   ;;  %s2105_s1 = inlined_call_operand.hbm [shape: f32[160,128], index: 1, kind: input, shape index: {}]   ;;  %s2106_s2 = inlined_call_operand.hbm [shape: f32[8,128], index: 2, kind: output, shape index: {}]  }
   0x1   :  { %8 = vsyncpa [#allocation8], 0  ;;  %s15_s11 = sshll.u32 %s2105_s1, 4  ;;  %s1771_s12 = smov [#allocation6]   ;;  %s16_s11 = int_to_ptr.hbm [resolvable:$true] %s15_s11 }
   0x2   :  { %s17_s13 = sshll.u32 %s1771_s12, 4  ;;  %s1772_s14 = smov 128   ;;  %s18_s13 = int_to_ptr.vmem [resolvable:$true] %s17_s13 }
   0x3   :  { %s1773_s15 = smov 8  }
   0x4   :  { %23 = dma.hbm_to_vmem [thread:$0]  %s16_s11, 2560, %s18_s13, [#allocation7], %s1772_s14, %s1772_s14, %s1773_s15  }
   0x5   :  { %1767 = dma.done.wait [#allocation7], 2560  }
   0x6   :  { %1768 = vsyncadd [#allocation7], 4294964736  ;;  %vm117_vm0 = vcmask 261120   ;;  %v1774_v0 = vmov 0.0   ;;  %vm43_vm1 = vcmask 64512   ;;  %v1801_v1 = vld [vmem:[#allocation6 + $0x20] sm:$0xff] }
   0x7   :  { %118 = vst.msk [vmem:[#allocation2] sm:$0xff] %vm117_vm0, %v1774_v0  ;;  %v1803_v2 = vld [vmem:[#allocation6 + $0x18] sm:$0xff]  ;;  %v28_v3 = vld [vmem:[#allocation6] sm:$0xff]  ;;  %137 = vmatpush.msra.mxu1 %v1801_v1  ;;  %v34_v4 = vld [vmem:[%s2104_s0] sm:$0xff]  ;;  %217 = vmatpush.msra.mxu2 %v1801_v1  ;;  %s1775_s17 = smov 32   ;;  %s1776_s18 = smov 64  }
   0x8   :  { %119 = vst.msk [vmem:[#allocation3] sm:$0xff] %vm117_vm0, %v1774_v0  ;;  %83 = vmatpush.msra.mxu0 %v28_v3  ;;  %v1809_v5 = vld [vmem:[#allocation6 + $0x10] sm:$0xff]  ;;  %v1815_v6 = vld [vmem:[#allocation6 + $0x8] sm:$0xff]  ;;  %s1777_s19 = smov 96   ;;  %v768_v38 = vld [vmem:[#allocation6 + $0x40] sm:$0xff]  ;;  %s1521_s9 = sshll.u32 %s2106_s2, 4  ;;  %s1522_s9 = int_to_ptr.hbm [resolvable:$true] %s1521_s9 }
   0x9   :  { %1531 = vmatmul.msk.f32.vlgmr.msra.gmra.mxu0 %vm43_vm1, %v34_v4  ;;  %138 = vmatpush.msra.mxu1 %v1803_v2  ;;  %v1838_v8 = vld [vmem:[#allocation6 + $0x28] ss:$0 sm:$0xff]  ;;  %v767_v39 = vld [vmem:[#allocation6 + $0x38] sm:$0xff]  ;;  %v766_v40 = vld [vmem:[#allocation6 + $0x30] sm:$0xff] }
   0xa   :  { %541 = vmatpush.msrb.mxu0 %v1801_v1  ;;  %218 = vmatpush.msra.mxu2 %v1803_v2  ;;  %v769_v37 = vld [vmem:[#allocation6 + $0x48] sm:$0xff]  ;;  %v35_v41 = vld [vmem:[%s2104_s0 + $0x8] sm:$0xff] }
   0xb   :  { %139 = vmatpush.msra.mxu1 %v1809_v5  ;;  %820 = vmatpush.msra.mxu3 %v769_v37 }
   0xc   :  { %542 = vmatpush.msrb.mxu0 %v1803_v2  ;;  %219 = vmatpush.msra.mxu2 %v1809_v5 }
   0xd   :  { %140 = vmatpush.msra.mxu1 %v1815_v6  ;;  %821 = vmatpush.msra.mxu3 %v768_v38 }
   0xe   :  { %v121_v7 = vld [vmem:[#allocation2] sm:$0xff]  ;;  %543 = vmatpush.msrb.mxu0 %v1809_v5  ;;  %220 = vmatpush.msra.mxu2 %v1815_v6 }
   0xf   :  { %1539 = vmatmul.msk.f32.vlgmr.msra.gmra.mxu1 %vm117_vm0, %v121_v7  ;;  %v166_v14 = vld [vmem:[#allocation3] sm:$0xff]  ;;  %822 = vmatpush.msra.mxu3 %v767_v39 }
  0x10   :  { %298 = vmatpush.msrb.mxu2 %v1801_v1  ;;  %379 = vmatpush.msrb.mxu1 %v1801_v1 }
  0x11   :  { %544 = vmatpush.msrb.mxu0 %v1815_v6  ;;  %823 = vmatpush.msra.mxu3 %v766_v40 }
  0x12   :  { %299 = vmatpush.msrb.mxu2 %v1803_v2  ;;  %380 = vmatpush.msrb.mxu1 %v1803_v2 }
  0x13   :  { %1532 = vmatmul.msk.f32.gmra.mxu0 %vm43_vm1, %v35_v41 }
  0x14   :  { %300 = vmatpush.msrb.mxu2 %v1809_v5  ;;  %381 = vmatpush.msrb.mxu1 %v1809_v5 }
  0x16   :  { %301 = vmatpush.msrb.mxu2 %v1815_v6  ;;  %382 = vmatpush.msrb.mxu1 %v1815_v6 }
  0x18   :  { %622 = vmatpush.msra.mxu1 %v1801_v1 }
  0x1a   :  { %623 = vmatpush.msra.mxu1 %v1803_v2 }
  0x1c   :  { %624 = vmatpush.msra.mxu1 %v1809_v5 }
  0x1e   :  { %625 = vmatpush.msra.mxu1 %v1815_v6 }
  0x86   :  { %v85_v9 = vpop.f32.mrf.mxu0 }
  0x87   :  { %v86_v10 = vadd.f32 %v1838_v8, %v85_v9 }
  0x8c   :  { %v142_v11 = vpop.f32.mrf.mxu1 }
  0x8d   :  { %v145_v12 = vadd.f32 %v142_v11, %v86_v10 }
  0x8f   :  { %1591 = vtanh.f32 %v145_v12  ;;  %v1540_v15 = vmul.f32 -1.442695, %v145_v12 }
  0x90   :  { %v88_v47 = vpop.f32.mrf.mxu0 }
  0x91   :  { %1593 = vpow2.f32 %v1540_v15  ;;  %v89_v48 = vadd.f32 %v1838_v8, %v88_v47  ;;  %v37_v47 = vld [vmem:[%s2104_s0 + $0x18] sm:$0xff] }
  0x95   :  { %v1592_v13 = vpop.eup %1591 }
  0x96   :  { %173 = vrot.lane.b32.xlu0 %v1592_v13, %s1775_s17 }
  0x97   :  { %v1594_v16 = vpop.eup %1593 }
  0x98   :  { %v149_v17 = vadd.f32 1.0, %v1594_v16 }
  0x9a   :  { %1595 = vrcp.f32 %v149_v17  ;;  %v161_v23 = vand.u32 2147483648, %v149_v17  ;;  %vm155_vm3 = vweird.f32 %v149_v17  ;;  %v159_v24 = vand.u32 2147483647, %v149_v17 }
  0x9c   :  { %v162_v26 = vor.u32 1.1754944e-38, %v161_v23  ;;  %vm160_vm5 = vcmp.eq.f32.partialorder %v159_v24, 8.507059e+37 }
  0x9e   :  { %168 = vrot.lane.b32.xlu0 %v166_v14, %s1775_s17 }
  0xa0   :  { %v1596_v18 = vpop.eup %1595 }
  0xa1   :  { %v151_v19 = vmul.f32 %v1596_v18, %v149_v17  ;;  %vm156_vm2 = vweird.f32 %v1596_v18 }
  0xa2   :  { %vm157_vm4 = vmor %vm155_vm3, %vm156_vm2 }
  0xa3   :  { %v152_v20 = vsub.f32 1.0, %v151_v19 }
  0xa5   :  { %v153_v21 = vmul.f32 %v1596_v18, %v152_v20 }
  0xa7   :  { %v154_v22 = vadd.f32 %v1596_v18, %v153_v21 }
  0xa9   :  { %v158_v25 = vsel %vm157_vm4, %v1596_v18, %v154_v22  ;;  %v36_v18 = vld [vmem:[%s2104_s0 + $0x10] sm:$0xff] }
  0xaa   :  { %v163_v28 = vsel %vm160_vm5, %v162_v26, %v158_v25  ;;  %1533 = vmatmul.msk.f32.gmra.mxu0 %vm43_vm1, %v36_v18 }
  0xb2   :  { %1534 = vmatmul.msk.f32.gmra.mxu0 %vm43_vm1, %v37_v47 }
 0x108   :  { %v174_v27 = vpop.permute.xlu0 %173 }
 0x109   :  { %v176_v29 = vmul.f32 %v174_v27, %v163_v28 }
 0x10b   :  { %178 = vrot.lane.b32.xlu1 %v176_v29, %s1775_s17 }
 0x110   :  { %v169_v30 = vpop.permute.xlu0 %168 }
 0x111   :  { %v171_v31 = vmul.f32 %v169_v30, %v163_v28 }
 0x127   :  { %v91_v22 = vpop.f32.mrf.mxu0 }
 0x128   :  { %v92_v23 = vadd.f32 %v1838_v8, %v91_v22  ;;  %v38_v22 = vld [vmem:[%s2104_s0 + $0x20] sm:$0xff] }
 0x129   :  { %1535 = vmatmul.msk.f32.gmra.mxu0 %vm43_vm1, %v38_v22 }
 0x17d   :  { %v179_v32 = vpop.permute.xlu1 %178 }
 0x17e   :  { %v181_v33 = vadd.f32 %v179_v32, %v171_v31 }
 0x180   :  { %1597 = vtanh.f32 %v181_v33 }
 0x186   :  { %v1598_v34 = vpop.eup %1597 }
 0x187   :  { %184 = vrot.lane.b32.xlu1 %v1598_v34, %s1775_s17 }
 0x1f9   :  { %v185_v35 = vpop.permute.xlu1 %184 }
 0x1fa   :  { %v187_v36 = vmul.f32 %v185_v35, %v163_v28 }
 0x1fc   :  { %194 = vrot.lane.b32.xlu2 %v187_v36, %s1776_s18 }
 0x204   :  { %189 = vrot.lane.b32.xlu2 %v181_v33, %s1777_s19 }
 0x256   :  { %v195_v42 = vpop.permute.xlu2 %194 }
 0x257   :  { %197 = vst.msk [vmem:[#allocation2] sm:$0xff] %vm117_vm0, %v195_v42 }
 0x258   :  { %198 = vst.msk [vmem:[#allocation4] sm:$0xff] %vm117_vm0, %v195_v42 }
 0x25e   :  { %v190_v43 = vpop.permute.xlu2 %189  ;;  %v201_v44 = vld [vmem:[#allocation2] sm:$0xff] }
 0x25f   :  { %192 = vst.msk [vmem:[#allocation3] sm:$0xff] %vm117_vm0, %v190_v43  ;;  %1541 = vmatmul.msk.f32.vlgmr.msra.gmra.mxu2 %vm117_vm0, %v201_v44  ;;  %v775_v45 = vld [vmem:[#allocation4] sm:$0xff] }
 0x260   :  { %1555 = vmatmul.msk.f32.vlgmr.msra.gmra.mxu3 %vm117_vm0, %v775_v45  ;;  %460 = vmatpush.msra.mxu2 %v1801_v1 }
 0x262   :  { %461 = vmatpush.msra.mxu2 %v1803_v2 }
 0x264   :  { %462 = vmatpush.msra.mxu2 %v1809_v5 }
 0x266   :  { %v246_v46 = vld [vmem:[#allocation3] sm:$0xff]  ;;  %463 = vmatpush.msra.mxu2 %v1815_v6 }
 0x267   :  { %248 = vrot.lane.b32.xlu1 %v246_v46, %s1775_s17 }
 0x2d9   :  { %v249_v9 = vpop.permute.xlu1 %248 }
 0x2e2   :  { %v222_v49 = vpop.f32.mrf.mxu2 }
 0x2e3   :  { %v225_v50 = vadd.f32 %v222_v49, %v89_v48 }
 0x2e5   :  { %1599 = vtanh.f32 %v225_v50  ;;  %v1542_v52 = vmul.f32 -1.442695, %v225_v50 }
 0x2e7   :  { %1601 = vpow2.f32 %v1542_v52 }
 0x2eb   :  { %v1600_v51 = vpop.eup %1599 }
 0x2ec   :  { %253 = vrot.lane.b32.xlu0 %v1600_v51, %s1775_s17  ;;  %v94_v51 = vpop.f32.mrf.mxu0 }
 0x2ed   :  { %v1602_v53 = vpop.eup %1601  ;;  %v95_v52 = vadd.f32 %v1838_v8, %v94_v51 }
 0x2ee   :  { %v229_v54 = vadd.f32 1.0, %v1602_v53 }
 0x2f0   :  { %1603 = vrcp.f32 %v229_v54  ;;  %v241_v60 = vand.u32 2147483648, %v229_v54  ;;  %vm235_vm7 = vweird.f32 %v229_v54  ;;  %v239_v61 = vand.u32 2147483647, %v229_v54 }
 0x2f2   :  { %v242_v63 = vor.u32 1.1754944e-38, %v241_v60  ;;  %vm240_vm9 = vcmp.eq.f32.partialorder %v239_v61, 8.507059e+37 }
 0x2f6   :  { %v1604_v55 = vpop.eup %1603 }
 0x2f7   :  { %v231_v56 = vmul.f32 %v1604_v55, %v229_v54  ;;  %vm236_vm6 = vweird.f32 %v1604_v55 }
 0x2f8   :  { %vm237_vm8 = vmor %vm235_vm7, %vm236_vm6 }
 0x2f9   :  { %v232_v57 = vsub.f32 1.0, %v231_v56 }
 0x2fb   :  { %v233_v58 = vmul.f32 %v1604_v55, %v232_v57 }
 0x2fd   :  { %v234_v59 = vadd.f32 %v1604_v55, %v233_v58 }
 0x2ff   :  { %v238_v62 = vsel %vm237_vm8, %v1604_v55, %v234_v59 }
 0x300   :  { %v243_v4 = vsel %vm240_vm9, %v242_v63, %v238_v62 }
 0x301   :  { %v251_v10 = vmul.f32 %v249_v9, %v243_v4 }
 0x35e   :  { %v254_v3 = vpop.permute.xlu0 %253 }
 0x35f   :  { %v256_v7 = vmul.f32 %v254_v3, %v243_v4 }
 0x361   :  { %258 = vrot.lane.b32.xlu2 %v256_v7, %s1775_s17 }
 0x3bb   :  { %v259_v11 = vpop.permute.xlu2 %258 }
 0x3bc   :  { %v261_v12 = vadd.f32 %v259_v11, %v251_v10 }
 0x3be   :  { %1605 = vtanh.f32 %v261_v12  ;;  %269 = vrot.lane.b32.xlu2 %v261_v12, %s1777_s19 }
 0x3c4   :  { %v1606_v13 = vpop.eup %1605 }
 0x3c5   :  { %264 = vrot.lane.b32.xlu0 %v1606_v13, %s1775_s17 }
 0x418   :  { %v270_v14 = vpop.permute.xlu2 %269 }
 0x419   :  { %272 = vst.msk [vmem:[#allocation3] sm:$0xff] %vm117_vm0, %v270_v14 }
 0x420   :  { %v327_v17 = vld [vmem:[#allocation3] sm:$0xff] }
 0x437   :  { %v265_v15 = vpop.permute.xlu0 %264 }
 0x438   :  { %v267_v16 = vmul.f32 %v265_v15, %v243_v4 }
 0x43a   :  { %274 = vrot.lane.b32.xlu1 %v267_v16, %s1776_s18 }
 0x442   :  { %329 = vrot.lane.b32.xlu1 %v327_v17, %s1775_s17 }
 0x4ac   :  { %v275_v19 = vpop.permute.xlu1 %274 }
 0x4ad   :  { %277 = vst.msk [vmem:[#allocation2] sm:$0xff] %vm117_vm0, %v275_v19 }
 0x4ae   :  { %279 = vst.msk [vmem:[#allocation4 + $0x8] sm:$0xff] %vm117_vm0, %v275_v19 }
 0x4b4   :  { %v282_v20 = vld [vmem:[#allocation2] sm:$0xff]  ;;  %v330_v38 = vpop.permute.xlu1 %329 }
 0x4b5   :  { %1543 = vmatmul.msk.f32.vlgmr.msrb.gmra.mxu2 %vm117_vm0, %v282_v20  ;;  %v776_v21 = vld [vmem:[#allocation4 + $0x8] sm:$0xff] }
 0x4b6   :  { %1556 = vmatmul.msk.f32.gmra.mxu3 %vm117_vm0, %v776_v21  ;;  %703 = vmatpush.msrb.mxu2 %v1801_v1 }
 0x4b8   :  { %704 = vmatpush.msrb.mxu2 %v1803_v2 }
 0x4ba   :  { %705 = vmatpush.msrb.mxu2 %v1809_v5 }
 0x4bc   :  { %706 = vmatpush.msrb.mxu2 %v1815_v6 }
 0x538   :  { %v303_v24 = vpop.f32.mrf.mxu2 }
 0x539   :  { %v306_v25 = vadd.f32 %v303_v24, %v92_v23 }
 0x53b   :  { %1607 = vtanh.f32 %v306_v25  ;;  %v1544_v27 = vmul.f32 -1.442695, %v306_v25 }
 0x53d   :  { %1609 = vpow2.f32 %v1544_v27 }
 0x541   :  { %v1608_v26 = vpop.eup %1607 }
 0x542   :  { %334 = vrot.lane.b32.xlu0 %v1608_v26, %s1775_s17  ;;  %v97_v26 = vpop.f32.mrf.mxu0 }
 0x543   :  { %v1610_v28 = vpop.eup %1609  ;;  %v98_v27 = vadd.f32 %v1838_v8, %v97_v26 }
 0x544   :  { %v310_v29 = vadd.f32 1.0, %v1610_v28 }
 0x546   :  { %1611 = vrcp.f32 %v310_v29  ;;  %v322_v6 = vand.u32 2147483648, %v310_v29  ;;  %vm316_vm11 = vweird.f32 %v310_v29  ;;  %v320_v32 = vand.u32 2147483647, %v310_v29 }
 0x548   :  { %v323_v34 = vor.u32 1.1754944e-38, %v322_v6  ;;  %vm321_vm13 = vcmp.eq.f32.partialorder %v320_v32, 8.507059e+37 }
 0x54c   :  { %v1612_v1 = vpop.eup %1611 }
 0x54d   :  { %v312_v2 = vmul.f32 %v1612_v1, %v310_v29  ;;  %vm317_vm10 = vweird.f32 %v1612_v1 }
 0x54e   :  { %vm318_vm12 = vmor %vm316_vm11, %vm317_vm10 }
 0x54f   :  { %v313_v30 = vsub.f32 1.0, %v312_v2 }
 0x551   :  { %v314_v5 = vmul.f32 %v1612_v1, %v313_v30 }
 0x553   :  { %v315_v31 = vadd.f32 %v1612_v1, %v314_v5 }
 0x555   :  { %v319_v33 = vsel %vm318_vm12, %v1612_v1, %v315_v31 }
 0x556   :  { %v324_v36 = vsel %vm321_vm13, %v323_v34, %v319_v33 }
 0x557   :  { %v332_v39 = vmul.f32 %v330_v38, %v324_v36 }
 0x5b4   :  { %v335_v35 = vpop.permute.xlu0 %334 }
 0x5b5   :  { %v337_v37 = vmul.f32 %v335_v35, %v324_v36 }
 0x5b7   :  { %339 = vrot.lane.b32.xlu2 %v337_v37, %s1775_s17 }
 0x611   :  { %v340_v40 = vpop.permute.xlu2 %339 }
 0x612   :  { %v342_v41 = vadd.f32 %v340_v40, %v332_v39 }
 0x614   :  { %1613 = vtanh.f32 %v342_v41  ;;  %350 = vrot.lane.b32.xlu2 %v342_v41, %s1777_s19 }
 0x61a   :  { %v1614_v42 = vpop.eup %1613 }
 0x61b   :  { %345 = vrot.lane.b32.xlu0 %v1614_v42, %s1775_s17 }
 0x66e   :  { %v351_v43 = vpop.permute.xlu2 %350 }
 0x66f   :  { %353 = vst.msk [vmem:[#allocation3] sm:$0xff] %vm117_vm0, %v351_v43 }
 0x676   :  { %v408_v46 = vld [vmem:[#allocation3] sm:$0xff] }
 0x68d   :  { %v346_v44 = vpop.permute.xlu0 %345 }
 0x68e   :  { %v348_v45 = vmul.f32 %v346_v44, %v324_v36 }
 0x690   :  { %355 = vrot.lane.b32.xlu1 %v348_v45, %s1776_s18 }
 0x698   :  { %410 = vrot.lane.b32.xlu1 %v408_v46, %s1775_s17 }
 0x702   :  { %v356_v48 = vpop.permute.xlu1 %355 }
 0x703   :  { %358 = vst.msk [vmem:[#allocation2] sm:$0xff] %vm117_vm0, %v356_v48 }
 0x704   :  { %360 = vst.msk [vmem:[#allocation4 + $0x10] sm:$0xff] %vm117_vm0, %v356_v48  ;;  %v39_v48 = vld [vmem:[%s2104_s0 + $0x28] sm:$0xff] }
 0x705   :  { %1536 = vmatmul.msk.f32.gmra.mxu0 %vm43_vm1, %v39_v48 }
 0x70a   :  { %v363_v49 = vld [vmem:[#allocation2] sm:$0xff]  ;;  %v411_v13 = vpop.permute.xlu1 %410 }
 0x70b   :  { %1545 = vmatmul.msk.f32.vlgmr.msrb.gmra.mxu1 %vm117_vm0, %v363_v49  ;;  %v777_v50 = vld [vmem:[#allocation4 + $0x10] sm:$0xff]  ;;  %v40_v49 = vld [vmem:[%s2104_s0 + $0x30] sm:$0xff] }
 0x70c   :  { %1557 = vmatmul.msk.f32.gmra.mxu3 %vm117_vm0, %v777_v50 }
 0x70d   :  { %1537 = vmatmul.msk.f32.gmra.mxu0 %vm43_vm1, %v40_v49 }
 0x788   :  { %v384_v53 = vpop.f32.mrf.mxu1 }
 0x789   :  { %v387_v54 = vadd.f32 %v384_v53, %v95_v52  ;;  %v41_v53 = vld [vmem:[%s2104_s0 + $0x38] sm:$0xff]  ;;  %s1778_s0 = smov [#allocation9]  }
 0x78a   :  { %1538 = vmatmul.msk.f32.gmra.mxu0 %vm43_vm1, %v41_v53  ;;  %s1519_s6 = sshll.u32 %s1778_s0, 4  ;;  %s1520_s6 = int_to_ptr.vmem [resolvable:$true] %s1519_s6 }
 0x78b   :  { %1615 = vtanh.f32 %v387_v54  ;;  %v1546_v56 = vmul.f32 -1.442695, %v387_v54 }
 0x78d   :  { %1617 = vpow2.f32 %v1546_v56 }
 0x791   :  { %v1616_v55 = vpop.eup %1615 }
 0x792   :  { %415 = vrot.lane.b32.xlu0 %v1616_v55, %s1775_s17 }
 0x793   :  { %v1618_v57 = vpop.eup %1617 }
 0x794   :  { %v391_v58 = vadd.f32 1.0, %v1618_v57  ;;  %v100_v57 = vpop.f32.mrf.mxu0 }
 0x796   :  { %1619 = vrcp.f32 %v391_v58  ;;  %v403_v3 = vand.u32 2147483648, %v391_v58  ;;  %vm397_vm15 = vweird.f32 %v391_v58  ;;  %v401_v4 = vand.u32 2147483647, %v391_v58 }
 0x798   :  { %v404_v9 = vor.u32 1.1754944e-38, %v403_v3  ;;  %vm402_vm3 = vcmp.eq.f32.partialorder %v401_v4, 8.507059e+37 }
 0x79c   :  { %v1620_v59 = vpop.eup %1619 }
 0x79d   :  { %v393_v60 = vmul.f32 %v1620_v59, %v391_v58  ;;  %vm398_vm14 = vweird.f32 %v1620_v59  ;;  %v103_v58 = vpop.f32.mrf.mxu0 }
 0x79e   :  { %vm399_vm2 = vmor %vm397_vm15, %vm398_vm14 }
 0x79f   :  { %v394_v61 = vsub.f32 1.0, %v393_v60  ;;  %v101_v60 = vadd.f32 %v1838_v8, %v100_v57 }
 0x7a1   :  { %v395_v62 = vmul.f32 %v1620_v59, %v394_v61 }
 0x7a3   :  { %v396_v63 = vadd.f32 %v1620_v59, %v395_v62 }
 0x7a5   :  { %v400_v7 = vsel %vm399_vm2, %v1620_v59, %v396_v63 }
 0x7a6   :  { %v405_v11 = vsel %vm402_vm3, %v404_v9, %v400_v7 }
 0x7a7   :  { %v413_v14 = vmul.f32 %v411_v13, %v405_v11 }
 0x804   :  { %v416_v10 = vpop.permute.xlu0 %415 }
 0x805   :  { %v418_v12 = vmul.f32 %v416_v10, %v405_v11 }
 0x807   :  { %420 = vrot.lane.b32.xlu2 %v418_v12, %s1775_s17  ;;  %v1937_v59 = vpop.f32.mrf.mxu0 }
 0x861   :  { %v421_v15 = vpop.permute.xlu2 %420 }
 0x862   :  { %v423_v16 = vadd.f32 %v421_v15, %v413_v14 }
 0x864   :  { %1621 = vtanh.f32 %v423_v16  ;;  %431 = vrot.lane.b32.xlu2 %v423_v16, %s1777_s19 }
 0x86a   :  { %v1622_v17 = vpop.eup %1621 }
 0x86b   :  { %426 = vrot.lane.b32.xlu0 %v1622_v17, %s1775_s17 }
 0x8be   :  { %v432_v18 = vpop.permute.xlu2 %431 }
 0x8bf   :  { %434 = vst.msk [vmem:[#allocation3] sm:$0xff] %vm117_vm0, %v432_v18 }
 0x8c6   :  { %v489_v21 = vld [vmem:[#allocation3] sm:$0xff] }
 0x8dd   :  { %v427_v19 = vpop.permute.xlu0 %426 }
 0x8de   :  { %v429_v20 = vmul.f32 %v427_v19, %v405_v11 }
 0x8e0   :  { %436 = vrot.lane.b32.xlu1 %v429_v20, %s1776_s18 }
 0x8e8   :  { %491 = vrot.lane.b32.xlu1 %v489_v21, %s1775_s17 }
 0x952   :  { %v437_v23 = vpop.permute.xlu1 %436 }
 0x953   :  { %439 = vst.msk [vmem:[#allocation2] sm:$0xff] %vm117_vm0, %v437_v23 }
 0x954   :  { %441 = vst.msk [vmem:[#allocation4 + $0x18] sm:$0xff] %vm117_vm0, %v437_v23 }
 0x95a   :  { %v444_v24 = vld [vmem:[#allocation2] sm:$0xff]  ;;  %v492_v42 = vpop.permute.xlu1 %491 }
 0x95b   :  { %1547 = vmatmul.msk.f32.vlgmr.msra.gmra.mxu2 %vm117_vm0, %v444_v24  ;;  %v778_v25 = vld [vmem:[#allocation4 + $0x18] sm:$0xff] }
 0x95c   :  { %1558 = vmatmul.msk.f32.gmra.mxu3 %vm117_vm0, %v778_v25 }
 0x9de   :  { %v465_v28 = vpop.f32.mrf.mxu2 }
 0x9df   :  { %v468_v29 = vadd.f32 %v465_v28, %v98_v27 }
 0x9e1   :  { %1623 = vtanh.f32 %v468_v29  ;;  %v1548_v2 = vmul.f32 -1.442695, %v468_v29 }
 0x9e3   :  { %1625 = vpow2.f32 %v1548_v2 }
 0x9e7   :  { %v1624_v1 = vpop.eup %1623 }
 0x9e8   :  { %496 = vrot.lane.b32.xlu0 %v1624_v1, %s1775_s17 }
 0x9e9   :  { %v1626_v30 = vpop.eup %1625 }
 0x9ea   :  { %v472_v5 = vadd.f32 1.0, %v1626_v30 }
 0x9ec   :  { %1627 = vrcp.f32 %v472_v5  ;;  %v484_v35 = vand.u32 2147483648, %v472_v5  ;;  %vm478_vm5 = vweird.f32 %v472_v5  ;;  %v482_v36 = vand.u32 2147483647, %v472_v5 }
 0x9ee   :  { %v485_v38 = vor.u32 1.1754944e-38, %v484_v35  ;;  %vm483_vm7 = vcmp.eq.f32.partialorder %v482_v36, 8.507059e+37 }
 0x9f2   :  { %v1628_v31 = vpop.eup %1627 }
 0x9f3   :  { %v474_v6 = vmul.f32 %v1628_v31, %v472_v5  ;;  %vm479_vm4 = vweird.f32 %v1628_v31  ;;  %v104_v5 = vadd.f32 %v1838_v8, %v103_v58 }
 0x9f4   :  { %vm480_vm6 = vmor %vm478_vm5, %vm479_vm4 }
 0x9f5   :  { %v475_v32 = vsub.f32 1.0, %v474_v6 }
 0x9f7   :  { %v476_v33 = vmul.f32 %v1628_v31, %v475_v32 }
 0x9f9   :  { %v477_v34 = vadd.f32 %v1628_v31, %v476_v33 }
 0x9fb   :  { %v481_v37 = vsel %vm480_vm6, %v1628_v31, %v477_v34 }
 0x9fc   :  { %v486_v40 = vsel %vm483_vm7, %v485_v38, %v481_v37 }
 0x9fd   :  { %v494_v43 = vmul.f32 %v492_v42, %v486_v40 }
 0xa5a   :  { %v497_v39 = vpop.permute.xlu0 %496 }
 0xa5b   :  { %v499_v41 = vmul.f32 %v497_v39, %v486_v40 }
 0xa5d   :  { %501 = vrot.lane.b32.xlu2 %v499_v41, %s1775_s17 }
 0xab7   :  { %v502_v44 = vpop.permute.xlu2 %501 }
 0xab8   :  { %v504_v45 = vadd.f32 %v502_v44, %v494_v43 }
 0xaba   :  { %1629 = vtanh.f32 %v504_v45  ;;  %512 = vrot.lane.b32.xlu2 %v504_v45, %s1777_s19 }
 0xac0   :  { %v1630_v46 = vpop.eup %1629 }
 0xac1   :  { %507 = vrot.lane.b32.xlu0 %v1630_v46, %s1775_s17 }
 0xb14   :  { %v513_v47 = vpop.permute.xlu2 %512 }
 0xb15   :  { %515 = vst.msk [vmem:[#allocation3] sm:$0xff] %vm117_vm0, %v513_v47 }
 0xb1c   :  { %v570_v52 = vld [vmem:[#allocation3] sm:$0xff] }
 0xb33   :  { %v508_v50 = vpop.permute.xlu0 %507 }
 0xb34   :  { %v510_v51 = vmul.f32 %v508_v50, %v486_v40 }
 0xb36   :  { %517 = vrot.lane.b32.xlu1 %v510_v51, %s1776_s18 }
 0xb3e   :  { %572 = vrot.lane.b32.xlu1 %v570_v52, %s1775_s17 }
 0xba8   :  { %v518_v54 = vpop.permute.xlu1 %517 }
 0xba9   :  { %520 = vst.msk [vmem:[#allocation2] sm:$0xff] %vm117_vm0, %v518_v54 }
 0xbaa   :  { %522 = vst.msk [vmem:[#allocation4 + $0x20] sm:$0xff] %vm117_vm0, %v518_v54 }
 0xbb0   :  { %v525_v55 = vld [vmem:[#allocation2] sm:$0xff]  ;;  %v573_v21 = vpop.permute.xlu1 %572 }
 0xbb1   :  { %1549 = vmatmul.msk.f32.vlgmr.msrb.gmra.mxu0 %vm117_vm0, %v525_v55  ;;  %v779_v56 = vld [vmem:[#allocation4 + $0x20] sm:$0xff] }
 0xbb2   :  { %1559 = vmatmul.msk.f32.gmra.mxu3 %vm117_vm0, %v779_v56 }
 0xc2e   :  { %v546_v61 = vpop.f32.mrf.mxu0 }
 0xc2f   :  { %v549_v62 = vadd.f32 %v546_v61, %v101_v60  ;;  %v107_v61 = vadd.f32 %v1838_v8, %v1937_v59 }
 0xc31   :  { %1631 = vtanh.f32 %v549_v62  ;;  %v1550_v3 = vmul.f32 -1.442695, %v549_v62 }
 0xc33   :  { %1633 = vpow2.f32 %v1550_v3 }
 0xc37   :  { %v1632_v63 = vpop.eup %1631 }
 0xc38   :  { %577 = vrot.lane.b32.xlu0 %v1632_v63, %s1775_s17 }
 0xc39   :  { %v1634_v4 = vpop.eup %1633 }
 0xc3a   :  { %v553_v7 = vadd.f32 1.0, %v1634_v4 }
 0xc3c   :  { %1635 = vrcp.f32 %v553_v7  ;;  %v565_v14 = vand.u32 2147483648, %v553_v7  ;;  %vm559_vm8 = vweird.f32 %v553_v7  ;;  %v563_v15 = vand.u32 2147483647, %v553_v7 }
 0xc3e   :  { %v566_v17 = vor.u32 1.1754944e-38, %v565_v14  ;;  %vm564_vm10 = vcmp.eq.f32.partialorder %v563_v15, 8.507059e+37 }
 0xc42   :  { %v1636_v9 = vpop.eup %1635 }
 0xc43   :  { %v555_v10 = vmul.f32 %v1636_v9, %v553_v7  ;;  %vm560_vm1 = vweird.f32 %v1636_v9 }
 0xc44   :  { %vm561_vm9 = vmor %vm559_vm8, %vm560_vm1 }
 0xc45   :  { %v556_v11 = vsub.f32 1.0, %v555_v10 }
 0xc47   :  { %v557_v12 = vmul.f32 %v1636_v9, %v556_v11 }
 0xc49   :  { %v558_v13 = vadd.f32 %v1636_v9, %v557_v12 }
 0xc4b   :  { %v562_v16 = vsel %vm561_vm9, %v1636_v9, %v558_v13 }
 0xc4c   :  { %v567_v19 = vsel %vm564_vm10, %v566_v17, %v562_v16 }
 0xc4d   :  { %v575_v22 = vmul.f32 %v573_v21, %v567_v19 }
 0xcaa   :  { %v578_v18 = vpop.permute.xlu0 %577 }
 0xcab   :  { %v580_v20 = vmul.f32 %v578_v18, %v567_v19 }
 0xcad   :  { %582 = vrot.lane.b32.xlu2 %v580_v20, %s1775_s17 }
 0xd07   :  { %v583_v23 = vpop.permute.xlu2 %582 }
 0xd08   :  { %v585_v24 = vadd.f32 %v583_v23, %v575_v22 }
 0xd0a   :  { %1637 = vtanh.f32 %v585_v24  ;;  %593 = vrot.lane.b32.xlu2 %v585_v24, %s1777_s19 }
 0xd10   :  { %v1638_v25 = vpop.eup %1637 }
 0xd11   :  { %588 = vrot.lane.b32.xlu0 %v1638_v25, %s1775_s17 }
 0xd64   :  { %v594_v26 = vpop.permute.xlu2 %593 }
 0xd65   :  { %596 = vst.msk [vmem:[#allocation3] sm:$0xff] %vm117_vm0, %v594_v26 }
 0xd6c   :  { %v651_v29 = vld [vmem:[#allocation3] sm:$0xff] }
 0xd83   :  { %v589_v27 = vpop.permute.xlu0 %588 }
 0xd84   :  { %v591_v28 = vmul.f32 %v589_v27, %v567_v19 }
 0xd86   :  { %598 = vrot.lane.b32.xlu1 %v591_v28, %s1776_s18  ;;  %v1973_v28 = vld [vmem:[#allocation6 + $0x68] sm:$0xff] }
 0xd87   :  { %876 = vmatpush.msrb.mxu1 %v1973_v28  ;;  %954 = vmatpush.msra.mxu2 %v1973_v28 }
 0xd8e   :  { %653 = vrot.lane.b32.xlu1 %v651_v29, %s1775_s17  ;;  %v1975_v29 = vld [vmem:[#allocation6 + $0x60] sm:$0xff] }
 0xd8f   :  { %877 = vmatpush.msrb.mxu1 %v1975_v29  ;;  %955 = vmatpush.msra.mxu2 %v1975_v29 }
 0xdf8   :  { %v599_v1 = vpop.permute.xlu1 %598 }
 0xdf9   :  { %601 = vst.msk [vmem:[#allocation2] sm:$0xff] %vm117_vm0, %v599_v1 }
 0xdfa   :  { %603 = vst.msk [vmem:[#allocation4 + $0x28] sm:$0xff] %vm117_vm0, %v599_v1  ;;  %v1979_v1 = vld [vmem:[#allocation6 + $0x58] sm:$0xff] }
 0xdfb   :  { %878 = vmatpush.msrb.mxu1 %v1979_v1  ;;  %956 = vmatpush.msra.mxu2 %v1979_v1 }
 0xe00   :  { %v606_v2 = vld [vmem:[#allocation2] sm:$0xff]  ;;  %v654_v48 = vpop.permute.xlu1 %653 }
 0xe01   :  { %1551 = vmatmul.msk.f32.vlgmr.msra.gmra.mxu1 %vm117_vm0, %v606_v2  ;;  %v780_v30 = vld [vmem:[#allocation4 + $0x28] sm:$0xff]  ;;  %v1983_v2 = vld [vmem:[#allocation6 + $0x50] sm:$0xff] }
 0xe02   :  { %1560 = vmatmul.msk.f32.gmra.mxu3 %vm117_vm0, %v780_v30  ;;  %879 = vmatpush.msrb.mxu1 %v1983_v2 }
 0xe03   :  { %957 = vmatpush.msra.mxu2 %v1983_v2 }
 0xe04   :  { %1032 = vmatpush.msra.mxu1 %v1973_v28 }
 0xe06   :  { %1033 = vmatpush.msra.mxu1 %v1975_v29 }
 0xe08   :  { %1034 = vmatpush.msra.mxu1 %v1979_v1 }
 0xe0a   :  { %1035 = vmatpush.msra.mxu1 %v1983_v2 }
 0xe7e   :  { %v627_v31 = vpop.f32.mrf.mxu1 }
 0xe7f   :  { %v630_v6 = vadd.f32 %v627_v31, %v104_v5 }
 0xe81   :  { %1639 = vtanh.f32 %v630_v6  ;;  %v1552_v33 = vmul.f32 -1.442695, %v630_v6 }
 0xe83   :  { %1641 = vpow2.f32 %v1552_v33  ;;  %v825_v33 = vpop.f32.mrf.mxu3 }
 0xe87   :  { %v1640_v32 = vpop.eup %1639 }
 0xe88   :  { %658 = vrot.lane.b32.xlu0 %v1640_v32, %s1775_s17  ;;  %v2008_v32 = vld [vmem:[#allocation6 + $0x70] ss:$0 sm:$0xff] }
 0xe89   :  { %v1642_v34 = vpop.eup %1641 }
 0xe8a   :  { %v634_v35 = vadd.f32 1.0, %v1642_v34  ;;  %v826_v34 = vadd.f32 %v2008_v32, %v825_v33 }
 0xe8c   :  { %1643 = vrcp.f32 %v634_v35  ;;  %v646_v41 = vand.u32 2147483648, %v634_v35  ;;  %vm640_vm12 = vweird.f32 %v634_v35  ;;  %v644_v42 = vand.u32 2147483647, %v634_v35 }
 0xe8e   :  { %v647_v44 = vor.u32 1.1754944e-38, %v646_v41  ;;  %vm645_vm14 = vcmp.eq.f32.partialorder %v644_v42, 8.507059e+37 }
 0xe92   :  { %v1644_v36 = vpop.eup %1643 }
 0xe93   :  { %v636_v37 = vmul.f32 %v1644_v36, %v634_v35  ;;  %vm641_vm11 = vweird.f32 %v1644_v36 }
 0xe94   :  { %vm642_vm13 = vmor %vm640_vm12, %vm641_vm11 }
 0xe95   :  { %v637_v38 = vsub.f32 1.0, %v636_v37 }
 0xe97   :  { %v638_v39 = vmul.f32 %v1644_v36, %v637_v38 }
 0xe99   :  { %v639_v40 = vadd.f32 %v1644_v36, %v638_v39 }
 0xe9b   :  { %v643_v43 = vsel %vm642_vm13, %v1644_v36, %v639_v40 }
 0xe9c   :  { %v648_v46 = vsel %vm645_vm14, %v647_v44, %v643_v43 }
 0xe9d   :  { %v656_v49 = vmul.f32 %v654_v48, %v648_v46 }
 0xefa   :  { %v659_v45 = vpop.permute.xlu0 %658 }
 0xefb   :  { %v661_v47 = vmul.f32 %v659_v45, %v648_v46 }
 0xefd   :  { %663 = vrot.lane.b32.xlu2 %v661_v47, %s1775_s17 }
 0xf57   :  { %v664_v50 = vpop.permute.xlu2 %663 }
 0xf58   :  { %v666_v51 = vadd.f32 %v664_v50, %v656_v49 }
 0xf5a   :  { %1645 = vtanh.f32 %v666_v51  ;;  %674 = vrot.lane.b32.xlu2 %v666_v51, %s1777_s19 }
 0xf60   :  { %v1646_v52 = vpop.eup %1645 }
 0xf61   :  { %669 = vrot.lane.b32.xlu0 %v1646_v52, %s1775_s17 }
 0xfb4   :  { %v675_v53 = vpop.permute.xlu2 %674 }
 0xfb5   :  { %677 = vst.msk [vmem:[#allocation3] sm:$0xff] %vm117_vm0, %v675_v53 }
 0xfbc   :  { %v732_v56 = vld [vmem:[#allocation3] sm:$0xff] }
 0xfd3   :  { %v670_v54 = vpop.permute.xlu0 %669 }
 0xfd4   :  { %v672_v55 = vmul.f32 %v670_v54, %v648_v46 }
 0xfd6   :  { %679 = vrot.lane.b32.xlu1 %v672_v55, %s1776_s18 }
 0xfde   :  { %734 = vrot.lane.b32.xlu1 %v732_v56, %s1775_s17 }
0x1048   :  { %v680_v57 = vpop.permute.xlu1 %679 }
0x1049   :  { %682 = vst.msk [vmem:[#allocation2] sm:$0xff] %vm117_vm0, %v680_v57 }
0x104a   :  { %684 = vst.msk [vmem:[#allocation4 + $0x30] sm:$0xff] %vm117_vm0, %v680_v57 }
0x1050   :  { %v687_v58 = vld [vmem:[#allocation2] sm:$0xff]  ;;  %v735_v20 = vpop.permute.xlu1 %734 }
0x1051   :  { %1553 = vmatmul.msk.f32.vlgmr.msrb.gmra.mxu2 %vm117_vm0, %v687_v58  ;;  %v781_v60 = vld [vmem:[#allocation4 + $0x30] sm:$0xff] }
0x1052   :  { %1561 = vmatmul.msk.f32.gmra.mxu3 %vm117_vm0, %v781_v60  ;;  %1110 = vmatpush.msrb.mxu2 %v1973_v28 }
0x1054   :  { %1111 = vmatpush.msrb.mxu2 %v1975_v29 }
0x1056   :  { %1112 = vmatpush.msrb.mxu2 %v1979_v1 }
0x1058   :  { %1113 = vmatpush.msrb.mxu2 %v1983_v2 }
0x10d4   :  { %v708_v62 = vpop.f32.mrf.mxu2 }
0x10d5   :  { %v711_v63 = vadd.f32 %v708_v62, %v107_v61 }
0x10d7   :  { %1647 = vtanh.f32 %v711_v63  ;;  %v1554_v4 = vmul.f32 -1.442695, %v711_v63 }
0x10d9   :  { %1649 = vpow2.f32 %v1554_v4 }
0x10dd   :  { %v1648_v3 = vpop.eup %1647 }
0x10de   :  { %739 = vrot.lane.b32.xlu0 %v1648_v3, %s1775_s17  ;;  %v828_v3 = vpop.f32.mrf.mxu3 }
0x10df   :  { %v1650_v7 = vpop.eup %1649  ;;  %v829_v4 = vadd.f32 %v2008_v32, %v828_v3 }
0x10e0   :  { %v715_v9 = vadd.f32 1.0, %v1650_v7 }
0x10e2   :  { %1651 = vrcp.f32 %v715_v9  ;;  %v727_v15 = vand.u32 2147483648, %v715_v9  ;;  %vm721_vm2 = vweird.f32 %v715_v9  ;;  %v725_v8 = vand.u32 2147483647, %v715_v9 }
0x10e4   :  { %v728_v16 = vor.u32 1.1754944e-38, %v727_v15  ;;  %vm726_vm4 = vcmp.eq.f32.partialorder %v725_v8, 8.507059e+37 }
0x10e8   :  { %v1652_v10 = vpop.eup %1651 }
0x10e9   :  { %v717_v11 = vmul.f32 %v1652_v10, %v715_v9  ;;  %vm722_vm15 = vweird.f32 %v1652_v10 }
0x10ea   :  { %vm723_vm3 = vmor %vm721_vm2, %vm722_vm15 }
0x10eb   :  { %v718_v12 = vsub.f32 1.0, %v717_v11 }
0x10ed   :  { %v719_v13 = vmul.f32 %v1652_v10, %v718_v12 }
0x10ef   :  { %v720_v14 = vadd.f32 %v1652_v10, %v719_v13 }
0x10f1   :  { %v724_v59 = vsel %vm723_vm3, %v1652_v10, %v720_v14 }
0x10f2   :  { %v729_v18 = vsel %vm726_vm4, %v728_v16, %v724_v59 }
0x10f3   :  { %v737_v21 = vmul.f32 %v735_v20, %v729_v18 }
0x1150   :  { %v740_v17 = vpop.permute.xlu0 %739 }
0x1151   :  { %v742_v19 = vmul.f32 %v740_v17, %v729_v18 }
0x1153   :  { %744 = vrot.lane.b32.xlu2 %v742_v19, %s1775_s17 }
0x11ad   :  { %v745_v22 = vpop.permute.xlu2 %744 }
0x11ae   :  { %v747_v23 = vadd.f32 %v745_v22, %v737_v21 }
0x11b0   :  { %1653 = vtanh.f32 %v747_v23  ;;  %755 = vrot.lane.b32.xlu2 %v747_v23, %s1777_s19 }
0x11b6   :  { %v1654_v24 = vpop.eup %1653 }
0x11b7   :  { %750 = vrot.lane.b32.xlu0 %v1654_v24, %s1775_s17 }
0x120a   :  { %v756_v25 = vpop.permute.xlu2 %755 }
0x120b   :  { %758 = vst.msk [vmem:[#allocation3] sm:$0xff] %vm117_vm0, %v756_v25 }
0x120c   :  { %858 = vst.msk [vmem:[#allocation3] sm:$0xff] %vm117_vm0, %v1774_v0 }
0x1213   :  { %v905_v30 = vld [vmem:[#allocation3] sm:$0xff] }
0x1229   :  { %v751_v26 = vpop.permute.xlu0 %750 }
0x122a   :  { %v753_v27 = vmul.f32 %v751_v26, %v729_v18 }
0x122c   :  { %760 = vrot.lane.b32.xlu1 %v753_v27, %s1776_s18 }
0x1234   :  { %907 = vrot.lane.b32.xlu1 %v905_v30, %s1775_s17 }
0x129e   :  { %v761_v5 = vpop.permute.xlu1 %760 }
0x129f   :  { %763 = vst.msk [vmem:[#allocation2] sm:$0xff] %vm117_vm0, %v761_v5 }
0x12a0   :  { %765 = vst.msk [vmem:[#allocation4 + $0x38] sm:$0xff] %vm117_vm0, %v761_v5 }
0x12a1   :  { %857 = vst.msk [vmem:[#allocation2] sm:$0xff] %vm117_vm0, %v1774_v0 }
0x12a6   :  { %v908_v52 = vpop.permute.xlu1 %907 }
0x12a7   :  { %v782_v31 = vld [vmem:[#allocation4 + $0x38] sm:$0xff] }
0x12a8   :  { %1562 = vmatmul.msk.f32.gmra.mxu3 %vm117_vm0, %v782_v31  ;;  %v860_v6 = vld [vmem:[#allocation2] sm:$0xff] }
0x12a9   :  { %1563 = vmatmul.msk.f32.vlgmr.msrb.gmra.mxu1 %vm117_vm0, %v860_v6 }
0x12aa   :  { %1188 = vmatpush.msrb.mxu1 %v1973_v28 }
0x12ac   :  { %1189 = vmatpush.msrb.mxu1 %v1975_v29 }
0x12ae   :  { %1190 = vmatpush.msrb.mxu1 %v1979_v1 }
0x12b0   :  { %1191 = vmatpush.msrb.mxu1 %v1983_v2 }
0x1326   :  { %v881_v0 = vpop.f32.mrf.mxu1 }
0x1327   :  { %v884_v35 = vadd.f32 %v881_v0, %v826_v34 }
0x1329   :  { %1655 = vtanh.f32 %v884_v35  ;;  %v1564_v37 = vmul.f32 -1.442695, %v884_v35  ;;  %v831_v35 = vpop.f32.mrf.mxu3 }
0x132b   :  { %1657 = vpow2.f32 %v1564_v37 }
0x132f   :  { %v1656_v36 = vpop.eup %1655 }
0x1330   :  { %912 = vrot.lane.b32.xlu0 %v1656_v36, %s1775_s17  ;;  %v832_v36 = vadd.f32 %v2008_v32, %v831_v35 }
0x1331   :  { %v1658_v38 = vpop.eup %1657 }
0x1332   :  { %v888_v39 = vadd.f32 1.0, %v1658_v38 }
0x1334   :  { %1659 = vrcp.f32 %v888_v39  ;;  %v900_v45 = vand.u32 2147483648, %v888_v39  ;;  %vm894_vm6 = vweird.f32 %v888_v39  ;;  %v898_v46 = vand.u32 2147483647, %v888_v39 }
0x1336   :  { %v901_v48 = vor.u32 1.1754944e-38, %v900_v45  ;;  %vm899_vm1 = vcmp.eq.f32.partialorder %v898_v46, 8.507059e+37 }
0x133a   :  { %v1660_v40 = vpop.eup %1659 }
0x133b   :  { %v890_v41 = vmul.f32 %v1660_v40, %v888_v39  ;;  %vm895_vm5 = vweird.f32 %v1660_v40 }
0x133c   :  { %vm896_vm7 = vmor %vm894_vm6, %vm895_vm5 }
0x133d   :  { %v891_v42 = vsub.f32 1.0, %v890_v41 }
0x133f   :  { %v892_v43 = vmul.f32 %v1660_v40, %v891_v42 }
0x1341   :  { %v893_v44 = vadd.f32 %v1660_v40, %v892_v43 }
0x1343   :  { %v897_v47 = vsel %vm896_vm7, %v1660_v40, %v893_v44 }
0x1344   :  { %v902_v49 = vsel %vm899_vm1, %v901_v48, %v897_v47 }
0x1345   :  { %v910_v53 = vmul.f32 %v908_v52, %v902_v49 }
0x13a2   :  { %v913_v50 = vpop.permute.xlu0 %912 }
0x13a3   :  { %v915_v51 = vmul.f32 %v913_v50, %v902_v49 }
0x13a5   :  { %917 = vrot.lane.b32.xlu2 %v915_v51, %s1775_s17 }
0x13ff   :  { %v918_v54 = vpop.permute.xlu2 %917 }
0x1400   :  { %v920_v55 = vadd.f32 %v918_v54, %v910_v53 }
0x1402   :  { %1661 = vtanh.f32 %v920_v55  ;;  %928 = vrot.lane.b32.xlu2 %v920_v55, %s1777_s19 }
0x1408   :  { %v1662_v56 = vpop.eup %1661 }
0x1409   :  { %923 = vrot.lane.b32.xlu0 %v1662_v56, %s1775_s17 }
0x145c   :  { %v929_v57 = vpop.permute.xlu2 %928 }
0x145d   :  { %931 = vst.msk [vmem:[#allocation3] sm:$0xff] %vm117_vm0, %v929_v57 }
0x1464   :  { %v983_v61 = vld [vmem:[#allocation3] sm:$0xff] }
0x147b   :  { %v924_v58 = vpop.permute.xlu0 %923 }
0x147c   :  { %v926_v60 = vmul.f32 %v924_v58, %v902_v49 }
0x147e   :  { %933 = vrot.lane.b32.xlu1 %v926_v60, %s1776_s18 }
0x1486   :  { %985 = vrot.lane.b32.xlu1 %v983_v61, %s1775_s17 }
0x14f0   :  { %v934_v62 = vpop.permute.xlu1 %933 }
0x14f1   :  { %936 = vst.msk [vmem:[#allocation2] sm:$0xff] %vm117_vm0, %v934_v62 }
0x14f8   :  { %v938_v63 = vld [vmem:[#allocation2] sm:$0xff]  ;;  %v986_v24 = vpop.permute.xlu1 %985 }
0x14f9   :  { %1565 = vmatmul.msk.f32.vlgmr.msra.gmra.mxu2 %vm117_vm0, %v938_v63 }
0x14fa   :  { %1266 = vmatpush.msra.mxu2 %v1973_v28 }
0x14fc   :  { %1267 = vmatpush.msra.mxu2 %v1975_v29 }
0x14fe   :  { %1268 = vmatpush.msra.mxu2 %v1979_v1 }
0x1500   :  { %1269 = vmatpush.msra.mxu2 %v1983_v2 }
0x157c   :  { %v959_v7 = vpop.f32.mrf.mxu2 }
0x157d   :  { %v962_v9 = vadd.f32 %v959_v7, %v829_v4 }
0x157f   :  { %1663 = vtanh.f32 %v962_v9  ;;  %v1566_v11 = vmul.f32 -1.442695, %v962_v9  ;;  %v834_v9 = vpop.f32.mrf.mxu3 }
0x1581   :  { %1665 = vpow2.f32 %v1566_v11 }
0x1585   :  { %v1664_v10 = vpop.eup %1663 }
0x1586   :  { %990 = vrot.lane.b32.xlu0 %v1664_v10, %s1775_s17  ;;  %v835_v10 = vadd.f32 %v2008_v32, %v834_v9 }
0x1587   :  { %v1666_v12 = vpop.eup %1665 }
0x1588   :  { %v966_v13 = vadd.f32 1.0, %v1666_v12 }
0x158a   :  { %1667 = vrcp.f32 %v966_v13  ;;  %v978_v17 = vand.u32 2147483648, %v966_v13  ;;  %vm972_vm9 = vweird.f32 %v966_v13  ;;  %v976_v18 = vand.u32 2147483647, %v966_v13 }
0x158c   :  { %v979_v20 = vor.u32 1.1754944e-38, %v978_v17  ;;  %vm977_vm11 = vcmp.eq.f32.partialorder %v976_v18, 8.507059e+37 }
0x1590   :  { %v1668_v14 = vpop.eup %1667 }
0x1591   :  { %v968_v15 = vmul.f32 %v1668_v14, %v966_v13  ;;  %vm973_vm8 = vweird.f32 %v1668_v14 }
0x1592   :  { %vm974_vm10 = vmor %vm972_vm9, %vm973_vm8 }
0x1593   :  { %v969_v8 = vsub.f32 1.0, %v968_v15 }
0x1595   :  { %v970_v59 = vmul.f32 %v1668_v14, %v969_v8 }
0x1597   :  { %v971_v16 = vadd.f32 %v1668_v14, %v970_v59 }
0x1599   :  { %v975_v19 = vsel %vm974_vm10, %v1668_v14, %v971_v16 }
0x159a   :  { %v980_v22 = vsel %vm977_vm11, %v979_v20, %v975_v19 }
0x159b   :  { %v988_v25 = vmul.f32 %v986_v24, %v980_v22 }
0x15f8   :  { %v991_v21 = vpop.permute.xlu0 %990 }
0x15f9   :  { %v993_v23 = vmul.f32 %v991_v21, %v980_v22 }
0x15fb   :  { %995 = vrot.lane.b32.xlu2 %v993_v23, %s1775_s17 }
0x1655   :  { %v996_v26 = vpop.permute.xlu2 %995 }
0x1656   :  { %v998_v27 = vadd.f32 %v996_v26, %v988_v25 }
0x1658   :  { %1669 = vtanh.f32 %v998_v27  ;;  %1006 = vrot.lane.b32.xlu2 %v998_v27, %s1777_s19 }
0x165e   :  { %v1670_v30 = vpop.eup %1669 }
0x165f   :  { %1001 = vrot.lane.b32.xlu0 %v1670_v30, %s1775_s17 }
0x16b2   :  { %v1007_v5 = vpop.permute.xlu2 %1006 }
0x16b3   :  { %1009 = vst.msk [vmem:[#allocation3] sm:$0xff] %vm117_vm0, %v1007_v5 }
0x16ba   :  { %v1061_v33 = vld [vmem:[#allocation3] sm:$0xff] }
0x16d1   :  { %v1002_v31 = vpop.permute.xlu0 %1001 }
0x16d2   :  { %v1004_v6 = vmul.f32 %v1002_v31, %v980_v22 }
0x16d4   :  { %1011 = vrot.lane.b32.xlu1 %v1004_v6, %s1776_s18 }
0x16dc   :  { %1063 = vrot.lane.b32.xlu1 %v1061_v33, %s1775_s17 }
0x1746   :  { %v1012_v34 = vpop.permute.xlu1 %1011 }
0x1747   :  { %1014 = vst.msk [vmem:[#allocation2] sm:$0xff] %vm117_vm0, %v1012_v34 }
0x174e   :  { %v1016_v0 = vld [vmem:[#allocation2] sm:$0xff]  ;;  %v1064_v55 = vpop.permute.xlu1 %1063 }
0x174f   :  { %1567 = vmatmul.msk.f32.vlgmr.msra.gmra.mxu1 %vm117_vm0, %v1016_v0  ;;  %v837_v0 = vpop.f32.mrf.mxu3 }
0x1750   :  { %1344 = vmatpush.msra.mxu1 %v1973_v28  ;;  %v838_v35 = vadd.f32 %v2008_v32, %v837_v0 }
0x1752   :  { %1345 = vmatpush.msra.mxu1 %v1975_v29 }
0x1754   :  { %1346 = vmatpush.msra.mxu1 %v1979_v1 }
0x1756   :  { %1347 = vmatpush.msra.mxu1 %v1983_v2 }
0x17cc   :  { %v1037_v37 = vpop.f32.mrf.mxu1 }
0x17cd   :  { %v1040_v38 = vadd.f32 %v1037_v37, %v832_v36 }
0x17cf   :  { %1671 = vtanh.f32 %v1040_v38  ;;  %v1568_v40 = vmul.f32 -1.442695, %v1040_v38 }
0x17d1   :  { %1673 = vpow2.f32 %v1568_v40 }
0x17d5   :  { %v1672_v39 = vpop.eup %1671 }
0x17d6   :  { %1068 = vrot.lane.b32.xlu0 %v1672_v39, %s1775_s17 }
0x17d7   :  { %v1674_v41 = vpop.eup %1673 }
0x17d8   :  { %v1044_v42 = vadd.f32 1.0, %v1674_v41 }
0x17da   :  { %1675 = vrcp.f32 %v1044_v42  ;;  %v1056_v48 = vand.u32 2147483648, %v1044_v42  ;;  %vm1050_vm13 = vweird.f32 %v1044_v42  ;;  %v1054_v49 = vand.u32 2147483647, %v1044_v42 }
0x17dc   :  { %v1057_v51 = vor.u32 1.1754944e-38, %v1056_v48  ;;  %vm1055_vm15 = vcmp.eq.f32.partialorder %v1054_v49, 8.507059e+37 }
0x17e0   :  { %v1676_v43 = vpop.eup %1675 }
0x17e1   :  { %v1046_v44 = vmul.f32 %v1676_v43, %v1044_v42  ;;  %vm1051_vm12 = vweird.f32 %v1676_v43 }
0x17e2   :  { %vm1052_vm14 = vmor %vm1050_vm13, %vm1051_vm12 }
0x17e3   :  { %v1047_v45 = vsub.f32 1.0, %v1046_v44 }
0x17e5   :  { %v1048_v46 = vmul.f32 %v1676_v43, %v1047_v45 }
0x17e7   :  { %v1049_v47 = vadd.f32 %v1676_v43, %v1048_v46 }
0x17e9   :  { %v1053_v50 = vsel %vm1052_vm14, %v1676_v43, %v1049_v47 }
0x17ea   :  { %v1058_v53 = vsel %vm1055_vm15, %v1057_v51, %v1053_v50 }
0x17eb   :  { %v1066_v56 = vmul.f32 %v1064_v55, %v1058_v53 }
0x1848   :  { %v1069_v52 = vpop.permute.xlu0 %1068 }
0x1849   :  { %v1071_v54 = vmul.f32 %v1069_v52, %v1058_v53 }
0x184b   :  { %1073 = vrot.lane.b32.xlu2 %v1071_v54, %s1775_s17 }
0x18a5   :  { %v1074_v57 = vpop.permute.xlu2 %1073 }
0x18a6   :  { %v1076_v58 = vadd.f32 %v1074_v57, %v1066_v56 }
0x18a8   :  { %1677 = vtanh.f32 %v1076_v58  ;;  %1084 = vrot.lane.b32.xlu2 %v1076_v58, %s1777_s19 }
0x18ae   :  { %v1678_v60 = vpop.eup %1677 }
0x18af   :  { %1079 = vrot.lane.b32.xlu0 %v1678_v60, %s1775_s17 }
0x1902   :  { %v1085_v61 = vpop.permute.xlu2 %1084 }
0x1903   :  { %1087 = vst.msk [vmem:[#allocation3] sm:$0xff] %vm117_vm0, %v1085_v61 }
0x190a   :  { %v1139_v3 = vld [vmem:[#allocation3] sm:$0xff] }
0x1921   :  { %v1080_v62 = vpop.permute.xlu0 %1079 }
0x1922   :  { %v1082_v63 = vmul.f32 %v1080_v62, %v1058_v53 }
0x1924   :  { %1089 = vrot.lane.b32.xlu1 %v1082_v63, %s1776_s18 }
0x192c   :  { %1141 = vrot.lane.b32.xlu1 %v1139_v3, %s1775_s17 }
0x1996   :  { %v1090_v4 = vpop.permute.xlu1 %1089 }
0x1997   :  { %1092 = vst.msk [vmem:[#allocation2] sm:$0xff] %vm117_vm0, %v1090_v4 }
0x199e   :  { %v1094_v7 = vld [vmem:[#allocation2] sm:$0xff]  ;;  %v1142_v23 = vpop.permute.xlu1 %1141 }
0x199f   :  { %1569 = vmatmul.msk.f32.vlgmr.msrb.gmra.mxu2 %vm117_vm0, %v1094_v7  ;;  %v840_v7 = vpop.f32.mrf.mxu3 }
0x19a0   :  { %1422 = vmatpush.msrb.mxu2 %v1973_v28  ;;  %v841_v9 = vadd.f32 %v2008_v32, %v840_v7 }
0x19a2   :  { %1423 = vmatpush.msrb.mxu2 %v1975_v29 }
0x19a4   :  { %1424 = vmatpush.msrb.mxu2 %v1979_v1 }
0x19a6   :  { %1425 = vmatpush.msrb.mxu2 %v1983_v2 }
0x1a22   :  { %v1115_v11 = vpop.f32.mrf.mxu2 }
0x1a23   :  { %v1118_v12 = vadd.f32 %v1115_v11, %v835_v10 }
0x1a25   :  { %1679 = vtanh.f32 %v1118_v12  ;;  %v1570_v14 = vmul.f32 -1.442695, %v1118_v12 }
0x1a27   :  { %1681 = vpow2.f32 %v1570_v14 }
0x1a2b   :  { %v1680_v13 = vpop.eup %1679 }
0x1a2c   :  { %1146 = vrot.lane.b32.xlu0 %v1680_v13, %s1775_s17 }
0x1a2d   :  { %v1682_v15 = vpop.eup %1681 }
0x1a2e   :  { %v1122_v8 = vadd.f32 1.0, %v1682_v15 }
0x1a30   :  { %1683 = vrcp.f32 %v1122_v8  ;;  %v1134_v2 = vand.u32 2147483648, %v1122_v8  ;;  %vm1128_vm3 = vweird.f32 %v1122_v8  ;;  %v1132_v17 = vand.u32 2147483647, %v1122_v8 }
0x1a32   :  { %v1135_v19 = vor.u32 1.1754944e-38, %v1134_v2  ;;  %vm1133_vm5 = vcmp.eq.f32.partialorder %v1132_v17, 8.507059e+37 }
0x1a36   :  { %v1684_v28 = vpop.eup %1683 }
0x1a37   :  { %v1124_v29 = vmul.f32 %v1684_v28, %v1122_v8  ;;  %vm1129_vm2 = vweird.f32 %v1684_v28 }
0x1a38   :  { %vm1130_vm4 = vmor %vm1128_vm3, %vm1129_vm2 }
0x1a39   :  { %v1125_v59 = vsub.f32 1.0, %v1124_v29 }
0x1a3b   :  { %v1126_v1 = vmul.f32 %v1684_v28, %v1125_v59 }
0x1a3d   :  { %v1127_v16 = vadd.f32 %v1684_v28, %v1126_v1 }
0x1a3f   :  { %v1131_v18 = vsel %vm1130_vm4, %v1684_v28, %v1127_v16 }
0x1a40   :  { %v1136_v21 = vsel %vm1133_vm5, %v1135_v19, %v1131_v18 }
0x1a41   :  { %v1144_v24 = vmul.f32 %v1142_v23, %v1136_v21 }
0x1a9e   :  { %v1147_v20 = vpop.permute.xlu0 %1146 }
0x1a9f   :  { %v1149_v22 = vmul.f32 %v1147_v20, %v1136_v21 }
0x1aa1   :  { %1151 = vrot.lane.b32.xlu2 %v1149_v22, %s1775_s17 }
0x1afb   :  { %v1152_v25 = vpop.permute.xlu2 %1151 }
0x1afc   :  { %v1154_v26 = vadd.f32 %v1152_v25, %v1144_v24 }
0x1afe   :  { %1685 = vtanh.f32 %v1154_v26  ;;  %1162 = vrot.lane.b32.xlu2 %v1154_v26, %s1777_s19 }
0x1b04   :  { %v1686_v27 = vpop.eup %1685 }
0x1b05   :  { %1157 = vrot.lane.b32.xlu0 %v1686_v27, %s1775_s17 }
0x1b58   :  { %v1163_v30 = vpop.permute.xlu2 %1162 }
0x1b59   :  { %1165 = vst.msk [vmem:[#allocation3] sm:$0xff] %vm117_vm0, %v1163_v30 }
0x1b60   :  { %v1217_v6 = vld [vmem:[#allocation3] sm:$0xff] }
0x1b77   :  { %v1158_v5 = vpop.permute.xlu0 %1157 }
0x1b78   :  { %v1160_v31 = vmul.f32 %v1158_v5, %v1136_v21 }
0x1b7a   :  { %1167 = vrot.lane.b32.xlu1 %v1160_v31, %s1776_s18 }
0x1b82   :  { %1219 = vrot.lane.b32.xlu1 %v1217_v6, %s1775_s17 }
0x1bec   :  { %v1168_v33 = vpop.permute.xlu1 %1167 }
0x1bed   :  { %1170 = vst.msk [vmem:[#allocation2] sm:$0xff] %vm117_vm0, %v1168_v33 }
0x1bf4   :  { %v1172_v34 = vld [vmem:[#allocation2] sm:$0xff]  ;;  %v1220_v54 = vpop.permute.xlu1 %1219 }
0x1bf5   :  { %1571 = vmatmul.msk.f32.vlgmr.msrb.gmra.mxu1 %vm117_vm0, %v1172_v34  ;;  %v843_v34 = vpop.f32.mrf.mxu3 }
0x1bf6   :  { %v844_v0 = vadd.f32 %v2008_v32, %v843_v34 }
0x1c72   :  { %v1193_v36 = vpop.f32.mrf.mxu1 }
0x1c73   :  { %v1196_v37 = vadd.f32 %v1193_v36, %v838_v35 }
0x1c75   :  { %1687 = vtanh.f32 %v1196_v37  ;;  %v1572_v39 = vmul.f32 -1.442695, %v1196_v37 }
0x1c77   :  { %1689 = vpow2.f32 %v1572_v39 }
0x1c7b   :  { %v1688_v38 = vpop.eup %1687 }
0x1c7c   :  { %1224 = vrot.lane.b32.xlu0 %v1688_v38, %s1775_s17 }
0x1c7d   :  { %v1690_v40 = vpop.eup %1689 }
0x1c7e   :  { %v1200_v41 = vadd.f32 1.0, %v1690_v40 }
0x1c80   :  { %1691 = vrcp.f32 %v1200_v41  ;;  %v1212_v47 = vand.u32 2147483648, %v1200_v41  ;;  %vm1206_vm7 = vweird.f32 %v1200_v41  ;;  %v1210_v48 = vand.u32 2147483647, %v1200_v41 }
0x1c82   :  { %v1213_v50 = vor.u32 1.1754944e-38, %v1212_v47  ;;  %vm1211_vm8 = vcmp.eq.f32.partialorder %v1210_v48, 8.507059e+37 }
0x1c86   :  { %v1692_v42 = vpop.eup %1691 }
0x1c87   :  { %v1202_v43 = vmul.f32 %v1692_v42, %v1200_v41  ;;  %vm1207_vm6 = vweird.f32 %v1692_v42 }
0x1c88   :  { %vm1208_vm1 = vmor %vm1206_vm7, %vm1207_vm6 }
0x1c89   :  { %v1203_v44 = vsub.f32 1.0, %v1202_v43 }
0x1c8b   :  { %v1204_v45 = vmul.f32 %v1692_v42, %v1203_v44 }
0x1c8d   :  { %v1205_v46 = vadd.f32 %v1692_v42, %v1204_v45 }
0x1c8f   :  { %v1209_v49 = vsel %vm1208_vm1, %v1692_v42, %v1205_v46 }
0x1c90   :  { %v1214_v52 = vsel %vm1211_vm8, %v1213_v50, %v1209_v49 }
0x1c91   :  { %v1222_v55 = vmul.f32 %v1220_v54, %v1214_v52 }
0x1cee   :  { %v1225_v51 = vpop.permute.xlu0 %1224 }
0x1cef   :  { %v1227_v53 = vmul.f32 %v1225_v51, %v1214_v52 }
0x1cf1   :  { %1229 = vrot.lane.b32.xlu2 %v1227_v53, %s1775_s17 }
0x1d4b   :  { %v1230_v56 = vpop.permute.xlu2 %1229 }
0x1d4c   :  { %v1232_v57 = vadd.f32 %v1230_v56, %v1222_v55 }
0x1d4e   :  { %1693 = vtanh.f32 %v1232_v57  ;;  %1240 = vrot.lane.b32.xlu2 %v1232_v57, %s1777_s19 }
0x1d54   :  { %v1694_v58 = vpop.eup %1693 }
0x1d55   :  { %1235 = vrot.lane.b32.xlu0 %v1694_v58, %s1775_s17 }
0x1da8   :  { %v1241_v60 = vpop.permute.xlu2 %1240 }
0x1da9   :  { %1243 = vst.msk [vmem:[#allocation3] sm:$0xff] %vm117_vm0, %v1241_v60 }
0x1db0   :  { %v1295_v63 = vld [vmem:[#allocation3] sm:$0xff] }
0x1dc7   :  { %v1236_v61 = vpop.permute.xlu0 %1235 }
0x1dc8   :  { %v1238_v62 = vmul.f32 %v1236_v61, %v1214_v52 }
0x1dca   :  { %1245 = vrot.lane.b32.xlu1 %v1238_v62, %s1776_s18 }
0x1dd2   :  { %1297 = vrot.lane.b32.xlu1 %v1295_v63, %s1775_s17 }
0x1e3c   :  { %v1246_v3 = vpop.permute.xlu1 %1245 }
0x1e3d   :  { %1248 = vst.msk [vmem:[#allocation2] sm:$0xff] %vm117_vm0, %v1246_v3 }
0x1e44   :  { %v1250_v4 = vld [vmem:[#allocation2] sm:$0xff]  ;;  %v1298_v22 = vpop.permute.xlu1 %1297 }
0x1e45   :  { %1573 = vmatmul.msk.f32.vlgmr.msra.gmra.mxu2 %vm117_vm0, %v1250_v4  ;;  %v846_v4 = vpop.f32.mrf.mxu3 }
0x1e46   :  { %v847_v7 = vadd.f32 %v2008_v32, %v846_v4 }
0x1ec8   :  { %v1271_v10 = vpop.f32.mrf.mxu2 }
0x1ec9   :  { %v1274_v11 = vadd.f32 %v1271_v10, %v841_v9 }
0x1ecb   :  { %1695 = vtanh.f32 %v1274_v11  ;;  %v1574_v13 = vmul.f32 -1.442695, %v1274_v11 }
0x1ecd   :  { %1697 = vpow2.f32 %v1574_v13 }
0x1ed1   :  { %v1696_v12 = vpop.eup %1695 }
0x1ed2   :  { %1302 = vrot.lane.b32.xlu0 %v1696_v12, %s1775_s17 }
0x1ed3   :  { %v1698_v14 = vpop.eup %1697 }
0x1ed4   :  { %v1278_v15 = vadd.f32 1.0, %v1698_v14 }
0x1ed6   :  { %1699 = vrcp.f32 %v1278_v15  ;;  %v1290_v16 = vand.u32 2147483648, %v1278_v15  ;;  %vm1284_vm10 = vweird.f32 %v1278_v15  ;;  %v1288_v2 = vand.u32 2147483647, %v1278_v15 }
0x1ed8   :  { %v1291_v18 = vor.u32 1.1754944e-38, %v1290_v16  ;;  %vm1289_vm12 = vcmp.eq.f32.partialorder %v1288_v2, 8.507059e+37 }
0x1edc   :  { %v1700_v8 = vpop.eup %1699 }
0x1edd   :  { %v1280_v28 = vmul.f32 %v1700_v8, %v1278_v15  ;;  %vm1285_vm9 = vweird.f32 %v1700_v8 }
0x1ede   :  { %vm1286_vm11 = vmor %vm1284_vm10, %vm1285_vm9 }
0x1edf   :  { %v1281_v29 = vsub.f32 1.0, %v1280_v28 }
0x1ee1   :  { %v1282_v59 = vmul.f32 %v1700_v8, %v1281_v29 }
0x1ee3   :  { %v1283_v1 = vadd.f32 %v1700_v8, %v1282_v59 }
0x1ee5   :  { %v1287_v17 = vsel %vm1286_vm11, %v1700_v8, %v1283_v1 }
0x1ee6   :  { %v1292_v20 = vsel %vm1289_vm12, %v1291_v18, %v1287_v17 }
0x1ee7   :  { %v1300_v23 = vmul.f32 %v1298_v22, %v1292_v20 }
0x1f44   :  { %v1303_v19 = vpop.permute.xlu0 %1302 }
0x1f45   :  { %v1305_v21 = vmul.f32 %v1303_v19, %v1292_v20 }
0x1f47   :  { %1307 = vrot.lane.b32.xlu2 %v1305_v21, %s1775_s17 }
0x1fa1   :  { %v1308_v24 = vpop.permute.xlu2 %1307 }
0x1fa2   :  { %v1310_v25 = vadd.f32 %v1308_v24, %v1300_v23 }
0x1fa4   :  { %1701 = vtanh.f32 %v1310_v25  ;;  %1318 = vrot.lane.b32.xlu2 %v1310_v25, %s1777_s19 }
0x1faa   :  { %v1702_v26 = vpop.eup %1701 }
0x1fab   :  { %1313 = vrot.lane.b32.xlu0 %v1702_v26, %s1775_s17 }
0x1ffe   :  { %v1319_v27 = vpop.permute.xlu2 %1318 }
0x1fff   :  { %1321 = vst.msk [vmem:[#allocation3] sm:$0xff] %vm117_vm0, %v1319_v27 }
0x2006   :  { %v1373_v31 = vld [vmem:[#allocation3] sm:$0xff] }
0x201d   :  { %v1314_v30 = vpop.permute.xlu0 %1313 }
0x201e   :  { %v1316_v5 = vmul.f32 %v1314_v30, %v1292_v20  ;;  %v1486_v30 = vld [vmem:[#allocation6 + $0x90] sm:$0xff] }
0x201f   :  { %1505 = vmatpush.msrb.mxu1 %v1486_v30 }
0x2020   :  { %1323 = vrot.lane.b32.xlu1 %v1316_v5, %s1776_s18  ;;  %v1485_v5 = vld [vmem:[#allocation6 + $0x88] sm:$0xff] }
0x2021   :  { %1506 = vmatpush.msrb.mxu1 %v1485_v5 }
0x2028   :  { %1375 = vrot.lane.b32.xlu1 %v1373_v31, %s1775_s17  ;;  %v1484_v31 = vld [vmem:[#allocation6 + $0x80] sm:$0xff] }
0x2029   :  { %1507 = vmatpush.msrb.mxu1 %v1484_v31 }
0x2092   :  { %v1324_v6 = vpop.permute.xlu1 %1323 }
0x2093   :  { %1326 = vst.msk [vmem:[#allocation2] sm:$0xff] %vm117_vm0, %v1324_v6  ;;  %v1483_v6 = vld [vmem:[#allocation6 + $0x78] sm:$0xff] }
0x2094   :  { %1508 = vmatpush.msrb.mxu1 %v1483_v6 }
0x209a   :  { %v1328_v33 = vld [vmem:[#allocation2] sm:$0xff]  ;;  %v1376_v53 = vpop.permute.xlu1 %1375 }
0x209b   :  { %1575 = vmatmul.msk.f32.vlgmr.msra.gmra.mxu1 %vm117_vm0, %v1328_v33 }
0x2118   :  { %v1349_v35 = vpop.f32.mrf.mxu1 }
0x2119   :  { %v1352_v36 = vadd.f32 %v1349_v35, %v844_v0  ;;  %v1590_v0 = vld [vmem:[#allocation6 + $0x98] ss:$0 sm:$0xff] }
0x211b   :  { %1703 = vtanh.f32 %v1352_v36  ;;  %v1576_v38 = vmul.f32 -1.442695, %v1352_v36 }
0x211d   :  { %1705 = vpow2.f32 %v1576_v38 }
0x2121   :  { %v1704_v37 = vpop.eup %1703 }
0x2122   :  { %1380 = vrot.lane.b32.xlu0 %v1704_v37, %s1775_s17 }
0x2123   :  { %v1706_v39 = vpop.eup %1705 }
0x2124   :  { %v1356_v40 = vadd.f32 1.0, %v1706_v39 }
0x2126   :  { %1707 = vrcp.f32 %v1356_v40  ;;  %v1368_v46 = vand.u32 2147483648, %v1356_v40  ;;  %vm1362_vm14 = vweird.f32 %v1356_v40  ;;  %v1366_v47 = vand.u32 2147483647, %v1356_v40 }
0x2128   :  { %v1369_v49 = vor.u32 1.1754944e-38, %v1368_v46  ;;  %vm1367_vm2 = vcmp.eq.f32.partialorder %v1366_v47, 8.507059e+37 }
0x212c   :  { %v1708_v41 = vpop.eup %1707 }
0x212d   :  { %v1358_v42 = vmul.f32 %v1708_v41, %v1356_v40  ;;  %vm1363_vm13 = vweird.f32 %v1708_v41 }
0x212e   :  { %vm1364_vm15 = vmor %vm1362_vm14, %vm1363_vm13 }
0x212f   :  { %v1359_v43 = vsub.f32 1.0, %v1358_v42 }
0x2131   :  { %v1360_v44 = vmul.f32 %v1708_v41, %v1359_v43 }
0x2133   :  { %v1361_v45 = vadd.f32 %v1708_v41, %v1360_v44 }
0x2135   :  { %v1365_v48 = vsel %vm1364_vm15, %v1708_v41, %v1361_v45 }
0x2136   :  { %v1370_v51 = vsel %vm1367_vm2, %v1369_v49, %v1365_v48 }
0x2137   :  { %v1378_v54 = vmul.f32 %v1376_v53, %v1370_v51 }
0x2194   :  { %v1381_v50 = vpop.permute.xlu0 %1380 }
0x2195   :  { %v1383_v52 = vmul.f32 %v1381_v50, %v1370_v51 }
0x2197   :  { %1385 = vrot.lane.b32.xlu2 %v1383_v52, %s1775_s17 }
0x21f1   :  { %v1386_v55 = vpop.permute.xlu2 %1385 }
0x21f2   :  { %v1388_v56 = vadd.f32 %v1386_v55, %v1378_v54 }
0x21f4   :  { %1709 = vtanh.f32 %v1388_v56  ;;  %1396 = vrot.lane.b32.xlu2 %v1388_v56, %s1777_s19 }
0x21fa   :  { %v1710_v57 = vpop.eup %1709 }
0x21fb   :  { %1391 = vrot.lane.b32.xlu0 %v1710_v57, %s1775_s17 }
0x224e   :  { %v1397_v58 = vpop.permute.xlu2 %1396 }
0x224f   :  { %1399 = vst.msk [vmem:[#allocation3] sm:$0xff] %vm117_vm0, %v1397_v58 }
0x2256   :  { %v1451_v62 = vld [vmem:[#allocation3] sm:$0xff] }
0x226d   :  { %v1392_v60 = vpop.permute.xlu0 %1391 }
0x226e   :  { %v1394_v61 = vmul.f32 %v1392_v60, %v1370_v51 }
0x2270   :  { %1401 = vrot.lane.b32.xlu1 %v1394_v61, %s1776_s18 }
0x2278   :  { %1453 = vrot.lane.b32.xlu1 %v1451_v62, %s1775_s17 }
0x22e2   :  { %v1402_v63 = vpop.permute.xlu1 %1401 }
0x22e3   :  { %1404 = vst.msk [vmem:[#allocation2] sm:$0xff] %vm117_vm0, %v1402_v63 }
0x22ea   :  { %v1406_v3 = vld [vmem:[#allocation2] sm:$0xff]  ;;  %v1454_v20 = vpop.permute.xlu1 %1453 }
0x22eb   :  { %1577 = vmatmul.msk.f32.vlgmr.msrb.gmra.mxu2 %vm117_vm0, %v1406_v3 }
0x236e   :  { %v1427_v9 = vpop.f32.mrf.mxu2 }
0x236f   :  { %v1430_v10 = vadd.f32 %v1427_v9, %v847_v7 }
0x2371   :  { %1711 = vtanh.f32 %v1430_v10  ;;  %v1578_v12 = vmul.f32 -1.442695, %v1430_v10 }
0x2373   :  { %1713 = vpow2.f32 %v1578_v12 }
0x2377   :  { %v1712_v11 = vpop.eup %1711 }
0x2378   :  { %1458 = vrot.lane.b32.xlu0 %v1712_v11, %s1775_s17 }
0x2379   :  { %v1714_v13 = vpop.eup %1713 }
0x237a   :  { %v1434_v14 = vadd.f32 1.0, %v1714_v13 }
0x237c   :  { %1715 = vrcp.f32 %v1434_v14  ;;  %v1446_v1 = vand.u32 2147483648, %v1434_v14  ;;  %vm1440_vm4 = vweird.f32 %v1434_v14  ;;  %v1444_v32 = vand.u32 2147483647, %v1434_v14 }
0x237e   :  { %v1447_v2 = vor.u32 1.1754944e-38, %v1446_v1  ;;  %vm1445_vm6 = vcmp.eq.f32.partialorder %v1444_v32, 8.507059e+37 }
0x2382   :  { %v1716_v15 = vpop.eup %1715 }
0x2383   :  { %v1436_v8 = vmul.f32 %v1716_v15, %v1434_v14  ;;  %vm1441_vm3 = vweird.f32 %v1716_v15 }
0x2384   :  { %vm1442_vm5 = vmor %vm1440_vm4, %vm1441_vm3 }
0x2385   :  { %v1437_v28 = vsub.f32 1.0, %v1436_v8 }
0x2387   :  { %v1438_v29 = vmul.f32 %v1716_v15, %v1437_v28 }
0x2389   :  { %v1439_v59 = vadd.f32 %v1716_v15, %v1438_v29 }
0x238b   :  { %v1443_v16 = vsel %vm1442_vm5, %v1716_v15, %v1439_v59 }
0x238c   :  { %v1448_v18 = vsel %vm1445_vm6, %v1447_v2, %v1443_v16 }
0x238d   :  { %v1456_v21 = vmul.f32 %v1454_v20, %v1448_v18 }
0x23ea   :  { %v1459_v17 = vpop.permute.xlu0 %1458 }
0x23eb   :  { %v1461_v19 = vmul.f32 %v1459_v17, %v1448_v18 }
0x23ed   :  { %1463 = vrot.lane.b32.xlu2 %v1461_v19, %s1775_s17 }
0x2447   :  { %v1464_v22 = vpop.permute.xlu2 %1463 }
0x2448   :  { %v1466_v23 = vadd.f32 %v1464_v22, %v1456_v21 }
0x244a   :  { %1717 = vtanh.f32 %v1466_v23  ;;  %1474 = vrot.lane.b32.xlu2 %v1466_v23, %s1777_s19 }
0x2450   :  { %v1718_v24 = vpop.eup %1717 }
0x2451   :  { %1469 = vrot.lane.b32.xlu0 %v1718_v24, %s1775_s17 }
0x24a4   :  { %v1475_v25 = vpop.permute.xlu2 %1474 }
0x24a5   :  { %1477 = vst.msk [vmem:[#allocation3] sm:$0xff] %vm117_vm0, %v1475_v25 }
0x24c3   :  { %v1470_v26 = vpop.permute.xlu0 %1469 }
0x24c4   :  { %v1472_v27 = vmul.f32 %v1470_v26, %v1448_v18 }
0x24c6   :  { %1479 = vrot.lane.b32.xlu1 %v1472_v27, %s1776_s18 }
0x2538   :  { %v1480_v33 = vpop.permute.xlu1 %1479 }
0x2539   :  { %1482 = vst.msk [vmem:[#allocation2] sm:$0xff] %vm117_vm0, %v1480_v33 }
0x2540   :  { %v1488_v34 = vld [vmem:[#allocation2] sm:$0xff] }
0x2541   :  { %1579 = vmatmul.msk.f32.vlgmr.msrb.gmra.mxu1 %vm117_vm0, %v1488_v34 }
0x25be   :  { %v1510_v35 = vpop.f32.mrf.mxu1 }
0x25bf   :  { %v1511_v36 = vadd.f32 %v1590_v0, %v1510_v35 }
0x25c1   :  { %1513 = vst [vmem:[#allocation9] sm:$0xff] %v1511_v36 }
0x25c2   :  { %1524 = dma.vmem_to_hbm [thread:$0]  %s1520_s6, 128, %s1522_s9, [#allocation8]  }
0x25c3   :  { %1769 = dma.done.wait [#allocation8], 128  }
0x25c4   :  { %1770 = vsyncadd [#allocation8], 4294967168 }
0x25c5   :  { %1529 = vsyncpa [#allocation7], 1 }
0x25c6   :  { %1530 = vsyncpa [#allocation8], 1 }

</bundles_post_ra>
